<compile_context>
chip_gen: v5e
topology: v5e:2x2
jax: 0.10.0
libtpu: 0.0.40
codegen_flags: <defaults>
</compile_context>

<pallas_src>
import functools

import jax
import jax.numpy as jnp
from jax.experimental import pallas as pl
from jax.experimental.pallas import tpu as pltpu

NEG_SLOPE = 0.01       # torch.nn.LeakyReLU default
LOGDET_LANES = 128     # width of the logdet block in the fused output slab


def _round_up(n, m):
    return ((n + m - 1) // m) * m


# ---------------------------------------------------------------------------
# Kernel: two fused affine-coupling passes + logdet, one batch tile per step.
# ---------------------------------------------------------------------------
def _coupling_kernel(x_ref, w0_ref, b0_ref, w1_ref, b1_ref, out_ref, *, n_lin, p):
    """x_ref:  (TB, 2P)  = [x0_pad | x1_pad]
       wX_ref: (n_lin, 2P, 2P) fused (block-diagonal) weights of pass X
       bX_ref: (n_lin, 1, 2P)  fused biases of pass X
       out_ref:(TB, 2P + 128)  = [x1' | x0' | logdet broadcast]"""
    x = x_ref[...]
    tb = x.shape[0]
    x0 = x[:, :p]
    x1 = x[:, p:]

    def fused_mlp(h, w_ref, b_ref):
        # BasicFullyConnectedNet for s and t simultaneously:
        # columns [0:P) carry the s-path, [P:2P) the t-path.
        for li in range(n_lin):
            h = jnp.dot(h, w_ref[li], preferred_element_type=jnp.float32) + b_ref[li]
            if li < n_lin - 1:
                h = jnp.maximum(h, NEG_SLOPE * h)      # LeakyReLU(0.01)
        return h[:, :p], h[:, p:]                      # (s pre-tanh, t)

    # ---- pass i = 0: nets read x0, transform x1 -------------------------
    # Feeding the full (x0|x1) slab is safe: rows [P:2P) of w0[0] are zero.
    s_pre, t0 = fused_mlp(x, w0_ref, b0_ref)
    scale0 = jnp.tanh(s_pre)                           # padded cols -> tanh(0)=0
    x1n = x1 * jnp.exp(scale0) + t0                    # padded cols stay 0
    logdet = jnp.sum(scale0, axis=1, keepdims=True)    # padded cols add 0

    # ---- pass i = 1: halves swapped -> nets read x1', transform x0 ------
    # Second half of the fused input is a don't-care (rows [P:2P) of w1[0]
    # are zero); reuse x0 as filler to avoid materialising zeros.
    s_pre, t1 = fused_mlp(jnp.concatenate([x1n, x0], axis=1), w1_ref, b1_ref)
    scale1 = jnp.tanh(s_pre)
    x0n = x0 * jnp.exp(scale1) + t1
    logdet = logdet + jnp.sum(scale1, axis=1, keepdims=True)

    # Single lane-dense store: after pass 1, x = cat((x1', x0')).
    out_ref[...] = jnp.concatenate(
        [x1n, x0n, jnp.broadcast_to(logdet, (tb, LOGDET_LANES))], axis=1)


# ---------------------------------------------------------------------------
# Wrapper: parameter packing, padding, grid setup, output unpacking.
# ---------------------------------------------------------------------------
def _pack_fused(s_params, t_params, p):
    """Pack one (s, t) net pair into a block-diagonal weight/bias slab.

    Layer 0 of both nets reads the shared apply-half (rows [0:dim1) of the
    fused K axis); later layers are block-diagonal (s rows/cols [0:P),
    t rows/cols [P:2P)).  All unused entries are zero, so lane padding is
    numerically inert (LeakyReLU(0)=0, tanh(0)=0, exp(0)=1).
    """
    n_lin = len(s_params) // 2
    w = jnp.zeros((n_lin, 2 * p, 2 * p), jnp.float32)
    b = jnp.zeros((n_lin, 1, 2 * p), jnp.float32)
    for li in range(n_lin):
        ws, bs = s_params[2 * li], s_params[2 * li + 1]
        wt, bt = t_params[2 * li], t_params[2 * li + 1]
        r_t = 0 if li == 0 else p       # layer 0: both paths read the apply-half
        w = w.at[li, 0:ws.shape[0], 0:ws.shape[1]].set(ws)
        w = w.at[li, r_t:r_t + wt.shape[0], p:p + wt.shape[1]].set(wt)
        b = b.at[li, 0, 0:bs.shape[-1]].set(bs.reshape(-1))
        b = b.at[li, 0, p:p + bt.shape[-1]].set(bt.reshape(-1))
    return w, b


def pure_affine_double_coupling_forward(x, net_params, *, batch_tile=256):
    """Forward of PureAffineDoubleCouplingFlowBlock (reverse=False).

    x: (B, C, 1, 1) float32, C even.
    net_params: [s0, t0, s1, t1], each a flat list [W0, b0, ..., W_{n-1}, b_{n-1}]
                with W stored as (in_features, out_features) and b as (1, out).
    Returns (h, logdet) with h of shape (B, C, 1, 1) and logdet of shape (B,).
    """
    B, C, H, W = x.shape
    assert H == 1 and W == 1, "module squeezes trailing 1x1 spatial dims"
    assert C % 2 == 0, "even in_channels only"  # TODO(synk): uneven chunk path
    d = C // 2

    s0, t0, s1, t1 = net_params
    n_lin = len(s0) // 2
    hidden_dim = s0[0].shape[1]

    # Lane padding of one channel/hidden half.
    P = max(128, _round_up(max(d, hidden_dim), 128))

    xf = x.reshape(B, C).astype(jnp.float32)
    x0, x1 = xf[:, :d], xf[:, d:]

    # Batch tiling (sublane-aligned); pad B up to a multiple of the tile.
    TB = min(batch_tile, _round_up(B, 8))
    B_pad = _round_up(B, TB)
    nb = B_pad // TB

    x0p = jnp.pad(x0, ((0, B_pad - B), (0, P - d)))
    x1p = jnp.pad(x1, ((0, B_pad - B), (0, P - d)))
    x_packed = jnp.concatenate([x0p, x1p], axis=1)          # (B_pad, 2P)

    # One-time parameter packing (in a real model: do this once at load time).
    W0, Bb0 = _pack_fused(s0, t0, P)
    W1, Bb1 = _pack_fused(s1, t1, P)

    OUT_W = 2 * P + LOGDET_LANES

    # Advisory cost estimate for the XLA scheduler.
    flops = int(2 * B_pad * 2 * n_lin * (2 * P) * (2 * P))
    transc = int(4 * B_pad * P)                              # tanh + exp, 2 passes
    bytes_acc = int(4 * (x_packed.size + W0.size + W1.size + Bb0.size + Bb1.size
                         + B_pad * OUT_W))

    out = pl.pallas_call(
        functools.partial(_coupling_kernel, n_lin=n_lin, p=P),
        out_shape=jax.ShapeDtypeStruct((B_pad, OUT_W), jnp.float32),
        grid_spec=pltpu.PrefetchScalarGridSpec(
            num_scalar_prefetch=0,
            grid=(nb,),
            in_specs=[
                pl.BlockSpec((TB, 2 * P), lambda i: (i, 0)),
                # constant index maps -> weights/biases DMA'd once, stay resident
                pl.BlockSpec((n_lin, 2 * P, 2 * P), lambda i: (0, 0, 0)),
                pl.BlockSpec((n_lin, 1, 2 * P), lambda i: (0, 0, 0)),
                pl.BlockSpec((n_lin, 2 * P, 2 * P), lambda i: (0, 0, 0)),
                pl.BlockSpec((n_lin, 1, 2 * P), lambda i: (0, 0, 0)),
            ],
            out_specs=pl.BlockSpec((TB, OUT_W), lambda i: (i, 0)),
        ),
        compiler_params=pltpu.CompilerParams(
            dimension_semantics=("parallel",)),          # 2x on v7x's 2 TCs
        cost_estimate=pl.CostEstimate(
            flops=flops, transcendentals=transc, bytes_accessed=bytes_acc),
    )(x_packed, W0, Bb0, W1, Bb1)

    h = jnp.concatenate([out[:B, :d], out[:B, P:P + d]], axis=1).reshape(B, C, 1, 1)
    logdet = out[:B, 2 * P]
    return h, logdet


# ---------------------------------------------------------------------------
# Deterministic parameter init (mimics torch.nn.Linear default U(-1/sqrt(fan_in)))
# ---------------------------------------------------------------------------
def init_basic_fc_net(key, dim, out_dim, depth, hidden_dim):
    sizes = [dim] + [hidden_dim] * (depth + 1) + [out_dim]
    params = []
    for i in range(len(sizes) - 1):
        fan_in, fan_out = sizes[i], sizes[i + 1]
        key, kw, kb = jax.random.split(key, 3)
        bound = 1.0 / float(fan_in) ** 0.5
        w = jax.random.uniform(kw, (fan_in, fan_out), jnp.float32, -bound, bound)
        b = jax.random.uniform(kb, (1, fan_out), jnp.float32, -bound, bound)
        params += [w, b]
    return params


# ---------------------------------------------------------------------------
# Pure-JAX reference (mirrors the PyTorch forward) for validation
# ---------------------------------------------------------------------------
def _mlp_ref(h, p, use_tanh):
    n = len(p) // 2
    for i in range(n):
        h = h @ p[2 * i] + p[2 * i + 1]
        if i < n - 1:
            h = jnp.where(h > 0, h, NEG_SLOPE * h)
    return jnp.tanh(h) if use_tanh else h


def reference_forward(x, net_params):
    B, C = x.shape[0], x.shape[1]
    xf = x.reshape(B, C).astype(jnp.float32)
    s0, t0, s1, t1 = net_params
    logdet = jnp.zeros((B,), jnp.float32)
    # i = 0
    x0, x1 = jnp.split(xf, 2, axis=1)
    sc = _mlp_ref(x0, s0, True)
    x1 = x1 * jnp.exp(sc) + _mlp_ref(x0, t0, False)
    logdet = logdet + jnp.sum(sc, axis=1)
    xf = jnp.concatenate([x0, x1], axis=1)
    # i = 1: swap halves
    xf = jnp.concatenate(jnp.split(xf, 2, axis=1)[::-1], axis=1)
    x0, x1 = jnp.split(xf, 2, axis=1)
    sc = _mlp_ref(x0, s1, True)
    x1 = x1 * jnp.exp(sc) + _mlp_ref(x0, t1, False)
    logdet = logdet + jnp.sum(sc, axis=1)
    xf = jnp.concatenate([x0, x1], axis=1)
    return xf.reshape(B, C, 1, 1), logdet


# ---------------------------------------------------------------------------
if __name__ == "__main__":
    in_channels = 8
    hidden_dim = 32
    hidden_depth = 2
    batch = 16          # small, but with batch_tile=8 it exercises a 2-step grid

    dim1 = in_channels // 2 + in_channels % 2
    dim2 = in_channels // 2

    key = jax.random.PRNGKey(0)
    key, kx, k0, k1, k2, k3 = jax.random.split(key, 6)

    # nets: s[0], t[0], s[1], t[1]
    net_params = [
        init_basic_fc_net(k0, dim1, dim2, hidden_depth, hidden_dim),  # s0 (tanh)
        init_basic_fc_net(k1, dim1, dim2, hidden_depth, hidden_dim),  # t0
        init_basic_fc_net(k2, dim1, dim2, hidden_depth, hidden_dim),  # s1 (tanh)
        init_basic_fc_net(k3, dim1, dim2, hidden_depth, hidden_dim),  # t1
    ]

    x = jax.random.normal(kx, (batch, in_channels, 1, 1), jnp.float32)

    h, logdet = pure_affine_double_coupling_forward(x, net_params, batch_tile=8)
    h = jax.block_until_ready(h)
    logdet = jax.block_until_ready(logdet)

    h_ref, logdet_ref = reference_forward(x, net_params)
    assert h.shape == (batch, in_channels, 1, 1)
    assert logdet.shape == (batch,)
    assert jnp.allclose(h, h_ref, rtol=1e-5, atol=1e-5), \
        float(jnp.max(jnp.abs(h - h_ref)))
    assert jnp.allclose(logdet, logdet_ref, rtol=1e-5, atol=1e-5), \
        float(jnp.max(jnp.abs(logdet - logdet_ref)))

    print("KERNEL_OK")
</pallas_src>

<mosaic_0001>
module attributes {stable_mosaic.version = 11 : i64} {
  func.func @_coupling_kernel(%arg0: i32, %arg1: memref<8x256xf32, #tpu.memory_space<vmem>>, %arg2: memref<4x256x256xf32, #tpu.memory_space<vmem>>, %arg3: memref<4x1x256xf32, #tpu.memory_space<vmem>>, %arg4: memref<4x256x256xf32, #tpu.memory_space<vmem>>, %arg5: memref<4x1x256xf32, #tpu.memory_space<vmem>>, %arg6: memref<8x384xf32, #tpu.memory_space<vmem>>) attributes {dimension_semantics = [#tpu.dimension_semantics<parallel>], iteration_bounds = array<i64: 2>, scalar_prefetch = 0 : i64, scratch_operands = 0 : i64, tpu.core_type = #tpu.core_type<tc>, window_params = [{transform_indices = @transform_0, window_bounds = array<i64: 8, 256>}, {pipeline_mode = #tpu.pipeline_mode<synchronous>, transform_indices = @transform_1, window_bounds = array<i64: 4, 256, 256>}, {pipeline_mode = #tpu.pipeline_mode<synchronous>, transform_indices = @transform_2, window_bounds = array<i64: 4, 1, 256>}, {pipeline_mode = #tpu.pipeline_mode<synchronous>, transform_indices = @transform_3, window_bounds = array<i64: 4, 256, 256>}, {pipeline_mode = #tpu.pipeline_mode<synchronous>, transform_indices = @transform_4, window_bounds = array<i64: 4, 1, 256>}, {transform_indices = @transform_5, window_bounds = array<i64: 8, 384>}]} {
    %c0 = arith.constant 0 : index
    %c0_0 = arith.constant 0 : index
    %0 = vector.load %arg1[%c0, %c0_0] : memref<8x256xf32, #tpu.memory_space<vmem>>, vector<8x256xf32>
    %1 = vector.extract_strided_slice %0 {offsets = [0, 0], sizes = [8, 128], strides = [1, 1]} : vector<8x256xf32> to vector<8x128xf32>
    %2 = vector.extract_strided_slice %0 {offsets = [0, 128], sizes = [8, 128], strides = [1, 1]} : vector<8x256xf32> to vector<8x128xf32>
    %c0_1 = arith.constant 0 : index
    %c0_2 = arith.constant 0 : index
    %c0_3 = arith.constant 0 : index
    %3 = vector.load %arg2[%c0_1, %c0_2, %c0_3] : memref<4x256x256xf32, #tpu.memory_space<vmem>>, vector<1x256x256xf32>
    %4 = vector.shape_cast %3 : vector<1x256x256xf32> to vector<256x256xf32>
    %cst = arith.constant dense<0.000000e+00> : vector<8x256xf32>
    %5 = tpu.matmul %0, %4, %cst {dimension_numbers = #tpu.dot_dimension_numbers<[1], [0], [0], [1], [0, 0, 1, 1], [], []>} : vector<8x256xf32>, vector<256x256xf32>, vector<8x256xf32> -> vector<8x256xf32>
    %c0_4 = arith.constant 0 : index
    %c0_5 = arith.constant 0 : index
    %c0_6 = arith.constant 0 : index
    %6 = vector.load %arg3[%c0_4, %c0_5, %c0_6] : memref<4x1x256xf32, #tpu.memory_space<vmem>>, vector<1x1x256xf32>
    %7 = vector.shape_cast %6 : vector<1x1x256xf32> to vector<1x256xf32>
    %8 = vector.broadcast %7 : vector<1x256xf32> to vector<8x256xf32>
    %9 = arith.addf %5, %8 : vector<8x256xf32>
    %cst_7 = arith.constant 0.00999999977 : f32
    %10 = vector.broadcast %cst_7 : f32 to vector<8x256xf32>
    %11 = arith.mulf %10, %9 : vector<8x256xf32>
    %12 = arith.maximumf %9, %11 : vector<8x256xf32>
    %c1 = arith.constant 1 : index
    %c0_8 = arith.constant 0 : index
    %c0_9 = arith.constant 0 : index
    %13 = vector.load %arg2[%c1, %c0_8, %c0_9] : memref<4x256x256xf32, #tpu.memory_space<vmem>>, vector<1x256x256xf32>
    %14 = vector.shape_cast %13 : vector<1x256x256xf32> to vector<256x256xf32>
    %cst_10 = arith.constant dense<0.000000e+00> : vector<8x256xf32>
    %15 = tpu.matmul %12, %14, %cst_10 {dimension_numbers = #tpu.dot_dimension_numbers<[1], [0], [0], [1], [0, 0, 1, 1], [], []>} : vector<8x256xf32>, vector<256x256xf32>, vector<8x256xf32> -> vector<8x256xf32>
    %c1_11 = arith.constant 1 : index
    %c0_12 = arith.constant 0 : index
    %c0_13 = arith.constant 0 : index
    %16 = vector.load %arg3[%c1_11, %c0_12, %c0_13] : memref<4x1x256xf32, #tpu.memory_space<vmem>>, vector<1x1x256xf32>
    %17 = vector.shape_cast %16 : vector<1x1x256xf32> to vector<1x256xf32>
    %18 = vector.broadcast %17 : vector<1x256xf32> to vector<8x256xf32>
    %19 = arith.addf %15, %18 : vector<8x256xf32>
    %cst_14 = arith.constant 0.00999999977 : f32
    %20 = vector.broadcast %cst_14 : f32 to vector<8x256xf32>
    %21 = arith.mulf %20, %19 : vector<8x256xf32>
    %22 = arith.maximumf %19, %21 : vector<8x256xf32>
    %c2 = arith.constant 2 : index
    %c0_15 = arith.constant 0 : index
    %c0_16 = arith.constant 0 : index
    %23 = vector.load %arg2[%c2, %c0_15, %c0_16] : memref<4x256x256xf32, #tpu.memory_space<vmem>>, vector<1x256x256xf32>
    %24 = vector.shape_cast %23 : vector<1x256x256xf32> to vector<256x256xf32>
    %cst_17 = arith.constant dense<0.000000e+00> : vector<8x256xf32>
    %25 = tpu.matmul %22, %24, %cst_17 {dimension_numbers = #tpu.dot_dimension_numbers<[1], [0], [0], [1], [0, 0, 1, 1], [], []>} : vector<8x256xf32>, vector<256x256xf32>, vector<8x256xf32> -> vector<8x256xf32>
    %c2_18 = arith.constant 2 : index
    %c0_19 = arith.constant 0 : index
    %c0_20 = arith.constant 0 : index
    %26 = vector.load %arg3[%c2_18, %c0_19, %c0_20] : memref<4x1x256xf32, #tpu.memory_space<vmem>>, vector<1x1x256xf32>
    %27 = vector.shape_cast %26 : vector<1x1x256xf32> to vector<1x256xf32>
    %28 = vector.broadcast %27 : vector<1x256xf32> to vector<8x256xf32>
    %29 = arith.addf %25, %28 : vector<8x256xf32>
    %cst_21 = arith.constant 0.00999999977 : f32
    %30 = vector.broadcast %cst_21 : f32 to vector<8x256xf32>
    %31 = arith.mulf %30, %29 : vector<8x256xf32>
    %32 = arith.maximumf %29, %31 : vector<8x256xf32>
    %c3 = arith.constant 3 : index
    %c0_22 = arith.constant 0 : index
    %c0_23 = arith.constant 0 : index
    %33 = vector.load %arg2[%c3, %c0_22, %c0_23] : memref<4x256x256xf32, #tpu.memory_space<vmem>>, vector<1x256x256xf32>
    %34 = vector.shape_cast %33 : vector<1x256x256xf32> to vector<256x256xf32>
    %cst_24 = arith.constant dense<0.000000e+00> : vector<8x256xf32>
    %35 = tpu.matmul %32, %34, %cst_24 {dimension_numbers = #tpu.dot_dimension_numbers<[1], [0], [0], [1], [0, 0, 1, 1], [], []>} : vector<8x256xf32>, vector<256x256xf32>, vector<8x256xf32> -> vector<8x256xf32>
    %c3_25 = arith.constant 3 : index
    %c0_26 = arith.constant 0 : index
    %c0_27 = arith.constant 0 : index
    %36 = vector.load %arg3[%c3_25, %c0_26, %c0_27] : memref<4x1x256xf32, #tpu.memory_space<vmem>>, vector<1x1x256xf32>
    %37 = vector.shape_cast %36 : vector<1x1x256xf32> to vector<1x256xf32>
    %38 = vector.broadcast %37 : vector<1x256xf32> to vector<8x256xf32>
    %39 = arith.addf %35, %38 : vector<8x256xf32>
    %40 = vector.extract_strided_slice %39 {offsets = [0, 0], sizes = [8, 128], strides = [1, 1]} : vector<8x256xf32> to vector<8x128xf32>
    %41 = vector.extract_strided_slice %39 {offsets = [0, 128], sizes = [8, 128], strides = [1, 1]} : vector<8x256xf32> to vector<8x128xf32>
    %42 = math.tanh %40 : vector<8x128xf32>
    %43 = math.exp %42 : vector<8x128xf32>
    %44 = arith.mulf %2, %43 : vector<8x128xf32>
    %45 = arith.addf %44, %41 : vector<8x128xf32>
    %cst_28 = arith.constant dense<0.000000e+00> : vector<8xf32>
    %46 = vector.multi_reduction <add>, %42, %cst_28 [1] : vector<8x128xf32> to vector<8xf32>
    %47 = vector.shape_cast %46 : vector<8xf32> to vector<8x1xf32>
    %48 = tpu.concatenate %45, %1 in 1 : vector<8x128xf32>, vector<8x128xf32> -> vector<8x256xf32>
    %c0_29 = arith.constant 0 : index
    %c0_30 = arith.constant 0 : index
    %c0_31 = arith.constant 0 : index
    %49 = vector.load %arg4[%c0_29, %c0_30, %c0_31] : memref<4x256x256xf32, #tpu.memory_space<vmem>>, vector<1x256x256xf32>
    %50 = vector.shape_cast %49 : vector<1x256x256xf32> to vector<256x256xf32>
    %cst_32 = arith.constant dense<0.000000e+00> : vector<8x256xf32>
    %51 = tpu.matmul %48, %50, %cst_32 {dimension_numbers = #tpu.dot_dimension_numbers<[1], [0], [0], [1], [0, 0, 1, 1], [], []>} : vector<8x256xf32>, vector<256x256xf32>, vector<8x256xf32> -> vector<8x256xf32>
    %c0_33 = arith.constant 0 : index
    %c0_34 = arith.constant 0 : index
    %c0_35 = arith.constant 0 : index
    %52 = vector.load %arg5[%c0_33, %c0_34, %c0_35] : memref<4x1x256xf32, #tpu.memory_space<vmem>>, vector<1x1x256xf32>
    %53 = vector.shape_cast %52 : vector<1x1x256xf32> to vector<1x256xf32>
    %54 = vector.broadcast %53 : vector<1x256xf32> to vector<8x256xf32>
    %55 = arith.addf %51, %54 : vector<8x256xf32>
    %cst_36 = arith.constant 0.00999999977 : f32
    %56 = vector.broadcast %cst_36 : f32 to vector<8x256xf32>
    %57 = arith.mulf %56, %55 : vector<8x256xf32>
    %58 = arith.maximumf %55, %57 : vector<8x256xf32>
    %c1_37 = arith.constant 1 : index
    %c0_38 = arith.constant 0 : index
    %c0_39 = arith.constant 0 : index
    %59 = vector.load %arg4[%c1_37, %c0_38, %c0_39] : memref<4x256x256xf32, #tpu.memory_space<vmem>>, vector<1x256x256xf32>
    %60 = vector.shape_cast %59 : vector<1x256x256xf32> to vector<256x256xf32>
    %cst_40 = arith.constant dense<0.000000e+00> : vector<8x256xf32>
    %61 = tpu.matmul %58, %60, %cst_40 {dimension_numbers = #tpu.dot_dimension_numbers<[1], [0], [0], [1], [0, 0, 1, 1], [], []>} : vector<8x256xf32>, vector<256x256xf32>, vector<8x256xf32> -> vector<8x256xf32>
    %c1_41 = arith.constant 1 : index
    %c0_42 = arith.constant 0 : index
    %c0_43 = arith.constant 0 : index
    %62 = vector.load %arg5[%c1_41, %c0_42, %c0_43] : memref<4x1x256xf32, #tpu.memory_space<vmem>>, vector<1x1x256xf32>
    %63 = vector.shape_cast %62 : vector<1x1x256xf32> to vector<1x256xf32>
    %64 = vector.broadcast %63 : vector<1x256xf32> to vector<8x256xf32>
    %65 = arith.addf %61, %64 : vector<8x256xf32>
    %cst_44 = arith.constant 0.00999999977 : f32
    %66 = vector.broadcast %cst_44 : f32 to vector<8x256xf32>
    %67 = arith.mulf %66, %65 : vector<8x256xf32>
    %68 = arith.maximumf %65, %67 : vector<8x256xf32>
    %c2_45 = arith.constant 2 : index
    %c0_46 = arith.constant 0 : index
    %c0_47 = arith.constant 0 : index
    %69 = vector.load %arg4[%c2_45, %c0_46, %c0_47] : memref<4x256x256xf32, #tpu.memory_space<vmem>>, vector<1x256x256xf32>
    %70 = vector.shape_cast %69 : vector<1x256x256xf32> to vector<256x256xf32>
    %cst_48 = arith.constant dense<0.000000e+00> : vector<8x256xf32>
    %71 = tpu.matmul %68, %70, %cst_48 {dimension_numbers = #tpu.dot_dimension_numbers<[1], [0], [0], [1], [0, 0, 1, 1], [], []>} : vector<8x256xf32>, vector<256x256xf32>, vector<8x256xf32> -> vector<8x256xf32>
    %c2_49 = arith.constant 2 : index
    %c0_50 = arith.constant 0 : index
    %c0_51 = arith.constant 0 : index
    %72 = vector.load %arg5[%c2_49, %c0_50, %c0_51] : memref<4x1x256xf32, #tpu.memory_space<vmem>>, vector<1x1x256xf32>
    %73 = vector.shape_cast %72 : vector<1x1x256xf32> to vector<1x256xf32>
    %74 = vector.broadcast %73 : vector<1x256xf32> to vector<8x256xf32>
    %75 = arith.addf %71, %74 : vector<8x256xf32>
    %cst_52 = arith.constant 0.00999999977 : f32
    %76 = vector.broadcast %cst_52 : f32 to vector<8x256xf32>
    %77 = arith.mulf %76, %75 : vector<8x256xf32>
    %78 = arith.maximumf %75, %77 : vector<8x256xf32>
    %c3_53 = arith.constant 3 : index
    %c0_54 = arith.constant 0 : index
    %c0_55 = arith.constant 0 : index
    %79 = vector.load %arg4[%c3_53, %c0_54, %c0_55] : memref<4x256x256xf32, #tpu.memory_space<vmem>>, vector<1x256x256xf32>
    %80 = vector.shape_cast %79 : vector<1x256x256xf32> to vector<256x256xf32>
    %cst_56 = arith.constant dense<0.000000e+00> : vector<8x256xf32>
    %81 = tpu.matmul %78, %80, %cst_56 {dimension_numbers = #tpu.dot_dimension_numbers<[1], [0], [0], [1], [0, 0, 1, 1], [], []>} : vector<8x256xf32>, vector<256x256xf32>, vector<8x256xf32> -> vector<8x256xf32>
    %c3_57 = arith.constant 3 : index
    %c0_58 = arith.constant 0 : index
    %c0_59 = arith.constant 0 : index
    %82 = vector.load %arg5[%c3_57, %c0_58, %c0_59] : memref<4x1x256xf32, #tpu.memory_space<vmem>>, vector<1x1x256xf32>
    %83 = vector.shape_cast %82 : vector<1x1x256xf32> to vector<1x256xf32>
    %84 = vector.broadcast %83 : vector<1x256xf32> to vector<8x256xf32>
    %85 = arith.addf %81, %84 : vector<8x256xf32>
    %86 = vector.extract_strided_slice %85 {offsets = [0, 0], sizes = [8, 128], strides = [1, 1]} : vector<8x256xf32> to vector<8x128xf32>
    %87 = vector.extract_strided_slice %85 {offsets = [0, 128], sizes = [8, 128], strides = [1, 1]} : vector<8x256xf32> to vector<8x128xf32>
    %88 = math.tanh %86 : vector<8x128xf32>
    %89 = math.exp %88 : vector<8x128xf32>
    %90 = arith.mulf %1, %89 : vector<8x128xf32>
    %91 = arith.addf %90, %87 : vector<8x128xf32>
    %cst_60 = arith.constant dense<0.000000e+00> : vector<8xf32>
    %92 = vector.multi_reduction <add>, %88, %cst_60 [1] : vector<8x128xf32> to vector<8xf32>
    %93 = vector.shape_cast %92 : vector<8xf32> to vector<8x1xf32>
    %94 = arith.addf %47, %93 : vector<8x1xf32>
    %95 = vector.shape_cast %94 : vector<8x1xf32> to vector<8x1xf32>
    %96 = vector.broadcast %95 : vector<8x1xf32> to vector<8x128xf32>
    %97 = tpu.concatenate %45, %91, %96 in 1 : vector<8x128xf32>, vector<8x128xf32>, vector<8x128xf32> -> vector<8x384xf32>
    %c0_61 = arith.constant 0 : index
    %c0_62 = arith.constant 0 : index
    %98 = vector.load %arg6[%c0_61, %c0_62] : memref<8x384xf32, #tpu.memory_space<vmem>>, vector<8x384xf32>
    tpu.vector_store %arg6[%c0_61, %c0_62], %97 {strides = array<i32>} : memref<8x384xf32, #tpu.memory_space<vmem>>, vector<8x384xf32>,
    return
  }
  func.func @transform_0(%arg0: i32) -> (i32, i32) {
    %c0_i32 = arith.constant 0 : i32
    %c0_i32_0 = arith.constant 0 : i32
    return %arg0, %c0_i32 : i32, i32
  }
  func.func @transform_1(%arg0: i32) -> (i32, i32, i32) {
    %c0_i32 = arith.constant 0 : i32
    %c0_i32_0 = arith.constant 0 : i32
    %c0_i32_1 = arith.constant 0 : i32
    %c0_i32_2 = arith.constant 0 : i32
    return %c0_i32, %c0_i32_0, %c0_i32_1 : i32, i32, i32
  }
  func.func @transform_2(%arg0: i32) -> (i32, i32, i32) {
    %c0_i32 = arith.constant 0 : i32
    %c0_i32_0 = arith.constant 0 : i32
    %c0_i32_1 = arith.constant 0 : i32
    %c0_i32_2 = arith.constant 0 : i32
    return %c0_i32, %c0_i32_0, %c0_i32_1 : i32, i32, i32
  }
  func.func @transform_3(%arg0: i32) -> (i32, i32, i32) {
    %c0_i32 = arith.constant 0 : i32
    %c0_i32_0 = arith.constant 0 : i32
    %c0_i32_1 = arith.constant 0 : i32
    %c0_i32_2 = arith.constant 0 : i32
    return %c0_i32, %c0_i32_0, %c0_i32_1 : i32, i32, i32
  }
  func.func @transform_4(%arg0: i32) -> (i32, i32, i32) {
    %c0_i32 = arith.constant 0 : i32
    %c0_i32_0 = arith.constant 0 : i32
    %c0_i32_1 = arith.constant 0 : i32
    %c0_i32_2 = arith.constant 0 : i32
    return %c0_i32, %c0_i32_0, %c0_i32_1 : i32, i32, i32
  }
  func.func @transform_5(%arg0: i32) -> (i32, i32) {
    %c0_i32 = arith.constant 0 : i32
    %c0_i32_0 = arith.constant 0 : i32
    return %arg0, %c0_i32 : i32, i32
  }
}

</mosaic_0001>

<bundles_post_ra>
// kernel: tpu_custom_call.1
= control target key start
LH: loop header
LB: loop body
LE: loop exit
PB: predicated region body
PF: predicated region fallthrough
CT: control target
= control target key end

     0   :  { %10 = vsyncpa [#allocation3], 0  ;;  %s2262_s0 = inlined_call_operand.hbm [shape: f32[16,256], index: 0, kind: input, shape index: {}]   ;;  %s2263_s1 = inlined_call_operand.hbm [shape: f32[4,256,256], index: 1, kind: input, shape index: {}]   ;;  %s2264_s2 = inlined_call_operand.hbm [shape: f32[4,1,256], index: 2, kind: input, shape index: {}]   ;;  %s2265_s3 = inlined_call_operand.hbm [shape: f32[4,256,256], index: 3, kind: input, shape index: {}]   ;;  %s2266_s4 = inlined_call_operand.hbm [shape: f32[4,1,256], index: 4, kind: input, shape index: {}]   ;;  %s2267_s5 = inlined_call_operand.hbm [shape: f32[16,384], index: 5, kind: output, shape index: {}]  }
   0x1   :  { %12 = vsyncpa [#allocation3 + $0x1], 0 }
   0x2   :  { %13 = vsyncpa [#allocation6], 0 }
   0x3   :  { %14 = vsyncpa [#allocation9], 0 }
   0x4   :  { %15 = vsyncpa [#allocation4], 0 }
   0x5   :  { %17 = vsyncpa [#allocation4 + $0x1], 0  ;;  %s2077_s18 = smov 0   ;;  %s2079_s19 = smov 0  }
   0x6   :  { %s2081_s20 = smov 0   ;;  %s2083_s21 = smov 0  }
   0x7 LB: > { %s175_s24 = sshll.u32 %s2263_s1, 4  ;;  %s2101_s25 = sadd.s32 4294967295, %s2037_s21   ;;  %s2037_s21 = sphi %s2083_s21, %s2279_s21   ;;  %s2033_s20 = sphi %s2081_s20, %s2278_s20   ;;  %s2029_s19 = sphi %s2079_s19, %s2277_s19   ;;  %s2025_s18 = sphi %s2077_s18, %s2276_s18   ;;  %s176_s24 = int_to_ptr.hbm [resolvable:$true] %s175_s24 }
   0x8   : > { %p1691_p0 = scmp.ge.s32.totalorder %s2037_s21, 1  ;;  %p44_p1 = scmp.eq.s32.totalorder %s2101_s25, 0 }
   0x9   : > { %p164_p2 = scmp.lt.s32.totalorder %s2037_s21, 3  ;;  %s2039_s27 = smov [#allocation5]  }
   0xa   : > { %s177_s28 = sshll.u32 %s2039_s27, 4  ;;  %s203_s6 = sshll.u32 %s2265_s3, 4  ;;  %s178_s28 = int_to_ptr.vmem [resolvable:$true] %s177_s28  ;;  %s204_s6 = int_to_ptr.hbm [resolvable:$true] %s203_s6 }
   0xb   : > { %p2106_p3 = pnand %p1691_p0, %p164_p2  ;;  %s189_s10 = sshll.u32 %s2264_s2, 4  ;;  %s190_s10 = int_to_ptr.hbm [resolvable:$true] %s189_s10 }
   0xc   : > { %s2040_s11 = smov [#allocation8]   ;;  %s2041_s13 = smov 256  }
   0xd   : > { %p1732_p4 = pneg %p2106_p3  ;;  %s205_s12 = sshll.u32 %s2040_s11, 4  ;;  %s206_s12 = int_to_ptr.vmem [resolvable:$true] %s205_s12 }
   0xe   : > { %s2042_s14 = smov 16   ;;  %s2043_s15 = smov [#allocation7]  }
   0xf   : > { %p2118_p6 = pnand %p1732_p4, %p44_p1  ;;  %s191_s16 = sshll.u32 %s2043_s15, 4  ;;  %s192_s16 = int_to_ptr.vmem [resolvable:$true] %s191_s16 }
  0x10   : > { %s217_s23 = sshll.u32 %s2266_s4, 4  ;;  %s2045_s27 = smov 2   ;;  %s218_s23 = int_to_ptr.hbm [resolvable:$true] %s217_s23 }
  0x11   : > { %1735 = dma.hbm_to_vmem [thread:$0]  (!%p2118_p6), %s176_s24, 32768, %s178_s28, [#allocation6], %s2041_s13, %s2041_s13, %s2042_s14  }
  0x12   : > { %1741 = dma.hbm_to_vmem [thread:$0]  (!%p2118_p6), %s204_s6, 32768, %s206_s12, [#allocation9], %s2041_s13, %s2041_s13, %s2042_s14  }
  0x13   : > { %s2044_s24 = smov 32   ;;  %s2046_s28 = smov [#allocation10]  }
  0x14   : > { %1738 = dma.hbm_to_vmem [thread:$0]  (!%p2118_p6), %s190_s10, 128, %s192_s16, [#allocation6], %s2044_s24, %s2044_s24, %s2045_s27  }
  0x15   : > { %s219_s29 = sshll.u32 %s2046_s28, 4  ;;  %s1690_s30 = sadd.s32 4294967294, %s2037_s21   ;;  %s220_s29 = int_to_ptr.vmem [resolvable:$true] %s219_s29 }
  0x16   : > { %1744 = dma.hbm_to_vmem [thread:$0]  (!%p2118_p6), %s218_s23, 128, %s220_s29, [#allocation9], %s2044_s24, %s2044_s24, %s2045_s27  }
  0x17   : > { %s2138_s6 = sadd.s32 1, %s2037_s21   ;;  %s30_s9 = sadd.s32 1, %s2033_s20 }
  0x18   : > { %s27_s8 = ssub.s32 %s2037_s21, %s2138_s6  ;;  %p37_p8 = scmp.ne.s32.totalorder %s2033_s20, %s2029_s19 }
  0x19   : > { %p28_p7 = scmp.eq.s32.totalorder %s27_s8, 0  ;;  %p38_p9 = scmp.eq.s32.totalorder %s2037_s21, 0 }
  0x1a   : > { %p43_p10 = scmp.ne.s32.totalorder %s2029_s19, %s2025_s18  ;;  %p151_p13 = scmp.eq.s32.totalorder %s2101_s25, 1 }
  0x1b   : > { %s2149_s10 = scalar_select %p28_p7, %s2033_s20, %s30_s9  }
  0x1c   : > { %p2151_p11 = por %p38_p9, %p37_p8  ;;  %p2157_p12 = por %p44_p1, %p43_p10 }
  0x1d   : > { %p157_p0 = scmp.eq.s32.totalorder %s1690_s30, 1  ;;  %p1757_p2 = scmp.lt.s32.totalorder %s2037_s21, 2 }
  0x1e   : > { %s233_s12 = sand.u32 1, %s2033_s20   ;;  %p2164_p4 = por %p151_p13, %p37_p8 }
  0x1f   : > { %p2168_p6 = por %p157_p0, %p43_p10  ;;  %s1697_s15 = sshll.u32 %s233_s12, 4 }
  0x20   : > { %s1709_s16 = sshll.u32 %s2037_s21, 4  ;;  %s237_s24 = scalar_lea.vmem [#allocation2], %s1697_s15 }
  0x21   : > { %s242_s23 = scalar_lea.hbm %s2262_s0, %s1709_s16  ;;  %s246_s27 = sshll.u32 %s237_s24, 4  ;;  %s247_s27 = int_to_ptr.vmem [resolvable:$true] %s246_s27 }
  0x22   : > { %s244_s28 = sshll.u32 %s242_s23, 4  ;;  %p2178_p7 = pnand %p1757_p2, %p2151_p11  ;;  %s245_s28 = int_to_ptr.hbm [resolvable:$true] %s244_s28 }
  0x23   : > { %s234_s30 = scalar_lea.sflag [#allocation3], %s233_s12  ;;  %s1933_s8 = sshra.s32 %s245_s28, 4  ;;  %s1934_s8 = int_to_ptr.hbm [resolvable:$true] %s1933_s8 }
  0x24   : > { %s1935_s9 = scalar_lea.hbm %s1934_s8, 16  ;;  %p1937_p9 = pneg %p2178_p7 }
  0x25   : > { %p1936_p8 = scmp.ne.s32.totalorder %s1934_s8, %s1935_s9  ;;  %s1940_s17 = scalar_lea.hbm %s2262_s0, 32 }
  0x26   : > { %p1941_p11 = scmp.lt.s32.totalorder %s1934_s8, %s2262_s0  ;;  %p1942_p0 = scmp.lt.s32.totalorder %s1940_s17, %s1935_s9 }
  0x27   : > { %p1938_p10 = pnand %p1937_p9, %p1936_p8 }
  0x28   : > { %p1943_p2 = por %p1942_p0, %p1941_p11 }
  0x29   : > { %p1939_p13 = pneg %p1938_p10 }
  0x2b   : > { %p1944_p5 = pnand %p1943_p2, %p1939_p13 }
  0x2d   : > { %1947 = shalt.err (!%p1944_p5)
}
  0x2e   : > { %1748 = dma.hbm_to_vmem [thread:$0]  (!%p2178_p7), %s245_s28, 256, %s247_s27, %s234_s30  }
  0x2f   : > { %255 = sbr.rel (%p2106_p3) target bundleno = 1325 (0x52d), region = 40  ;;  %s2195_s12 = sand.u32 (!%p2106_p3), 1, %s2029_s19  }
  0x30   : > { %s1701_s23 = sshll.u32 (!%p2106_p3), %s2195_s12, 4  ;;  %s258_s24 = scalar_lea.sflag (!%p2106_p3), [#allocation3], %s2195_s12 }
  0x31   : > { %s2199_s15 = scalar_lea.vmem (!%p2106_p3), [#allocation2], %s1701_s23 }
  0x34   : > { %2008 = dma.done.wait (%p2157_p12), %s258_s24, 256  }
  0x35   : > { %2010 = vsyncadd (%p2157_p12), %s258_s24, 4294967040 }
  0x36   : > { %2012 = dma.done.wait (%p44_p1), [#allocation6], 32896  }
  0x37   : > { %2014 = vsyncadd (%p44_p1), [#allocation6], 4294934400 }
  0x38   : > { %2016 = dma.done.wait (%p44_p1), [#allocation9], 32896  }
  0x39   : > { %2018 = vsyncadd (%p44_p1), [#allocation9], 4294934400  ;;  %v342_v0 = vld [vmem:[#allocation5 + $0xf8] sm:$0xff]  ;;  %v341_v1 = vld [vmem:[#allocation5 + $0xf0] sm:$0xff]  ;;  %s1710_s26 = smul.u32 24, %s2195_s12  ;;  %s1566_s16 = scalar_lea.sflag [#allocation4], %s2195_s12 }
  0x3a   : > { %v340_v2 = vld [vmem:[#allocation5 + $0xe8] sm:$0xff]  ;;  %421 = vmatpush.msra.mxu2 %v342_v0  ;;  %381 = vmatpush.msra.mxu0 %v341_v1  ;;  %v374_v3 = vld [vmem:[#allocation5 + $0x1f8] sm:$0xff]  ;;  %v339_v4 = vld [vmem:[#allocation5 + $0xe0] sm:$0xff]  ;;  %s1711_s27 = smul.u32 24, %s2101_s25  ;;  %s1983_s23 = scalar_lea.hbm %s2267_s5, 48 }
  0x3b   : > { %v373_v5 = vld [vmem:[#allocation5 + $0x1f0] sm:$0xff]  ;;  %441 = vmatpush.msra.mxu3 %v374_v3  ;;  %v338_v6 = vld [vmem:[#allocation5 + $0xd8] sm:$0xff]  ;;  %v372_v7 = vld [vmem:[#allocation5 + $0x1e8] sm:$0xff]  ;;  %s2222_s7 = scalar_lea.vmem [#allocation11], %s1710_s26 }
  0x3c   : > { %401 = vmatpush.msra.mxu1 %v373_v5  ;;  %v337_v8 = vld [vmem:[#allocation5 + $0xd0] sm:$0xff]  ;;  %422 = vmatpush.msra.mxu2 %v340_v2  ;;  %v371_v9 = vld [vmem:[#allocation5 + $0x1e0] sm:$0xff]  ;;  %v370_v10 = vld [vmem:[#allocation5 + $0x1d8] sm:$0xff]  ;;  %s1577_s30 = scalar_lea.hbm %s2267_s5, %s1711_s27  ;;  %s1579_s8 = sshll.u32 %s2222_s7, 4  ;;  %s1580_s8 = int_to_ptr.vmem [resolvable:$true] %s1579_s8 }
  0x3d   : > { %382 = vmatpush.msra.mxu0 %v339_v4  ;;  %442 = vmatpush.msra.mxu3 %v372_v7  ;;  %v336_v11 = vld [vmem:[#allocation5 + $0xc8] sm:$0xff]  ;;  %v335_v12 = vld [vmem:[#allocation5 + $0xc0] sm:$0xff]  ;;  %v369_v13 = vld [vmem:[#allocation5 + $0x1d0] sm:$0xff]  ;;  %s1581_s9 = sshll.u32 %s1577_s30, 4  ;;  %s1582_s9 = int_to_ptr.hbm [resolvable:$true] %s1581_s9 }
  0x3e   : > { %402 = vmatpush.msra.mxu1 %v371_v9  ;;  %423 = vmatpush.msra.mxu2 %v338_v6  ;;  %v368_v14 = vld [vmem:[#allocation5 + $0x1c8] sm:$0xff]  ;;  %v367_v15 = vld [vmem:[#allocation5 + $0x1c0] sm:$0xff]  ;;  %v334_v16 = vld [vmem:[#allocation5 + $0xb8] sm:$0xff]  ;;  %s1977_s17 = sshra.s32 %s1582_s9, 4  ;;  %s1978_s17 = int_to_ptr.hbm [resolvable:$true] %s1977_s17 }
  0x3f   : > { %383 = vmatpush.msra.mxu0 %v337_v8  ;;  %443 = vmatpush.msra.mxu3 %v370_v10  ;;  %v333_v17 = vld [vmem:[#allocation5 + $0xb0] sm:$0xff]  ;;  %v366_v18 = vld [vmem:[#allocation5 + $0x1b8] sm:$0xff]  ;;  %v332_v20 = vld [vmem:[#allocation5 + $0xa8] sm:$0xff]  ;;  %s1979_s22 = scalar_lea.hbm %s1978_s17, 24  ;;  %p1984_p12 = scmp.lt.s32.totalorder %s1978_s17, %s2267_s5 }
  0x40   : > { %403 = vmatpush.msra.mxu1 %v369_v13  ;;  %424 = vmatpush.msra.mxu2 %v336_v11  ;;  %v365_v19 = vld [vmem:[#allocation5 + $0x1b0] sm:$0xff]  ;;  %v331_v21 = vld [vmem:[#allocation5 + $0xa0] sm:$0xff]  ;;  %v364_v22 = vld [vmem:[#allocation5 + $0x1a8] sm:$0xff]  ;;  %p1980_p1 = scmp.ne.s32.totalorder %s1978_s17, %s1979_s22  ;;  %p1985_p7 = scmp.lt.s32.totalorder %s1983_s23, %s1979_s22 }
  0x41   : > { %384 = vmatpush.msra.mxu0 %v335_v12  ;;  %444 = vmatpush.msra.mxu3 %v368_v14  ;;  %v363_v23 = vld [vmem:[#allocation5 + $0x1a0] sm:$0xff]  ;;  %v330_v24 = vld [vmem:[#allocation5 + $0x98] sm:$0xff]  ;;  %v329_v25 = vld [vmem:[#allocation5 + $0x90] sm:$0xff] }
  0x42   : > { %404 = vmatpush.msra.mxu1 %v367_v15  ;;  %425 = vmatpush.msra.mxu2 %v334_v16  ;;  %v362_v26 = vld [vmem:[#allocation5 + $0x198] sm:$0xff]  ;;  %v361_v27 = vld [vmem:[#allocation5 + $0x190] sm:$0xff]  ;;  %v328_v28 = vld [vmem:[#allocation5 + $0x88] sm:$0xff]  ;;  %p1981_p3 = pnand %p1980_p1, %p2164_p4  ;;  %p1986_p8 = por %p1985_p7, %p1984_p12 }
  0x43   : > { %385 = vmatpush.msra.mxu0 %v333_v17  ;;  %445 = vmatpush.msra.mxu3 %v366_v18  ;;  %v327_v29 = vld [vmem:[#allocation5 + $0x80] sm:$0xff]  ;;  %v360_v30 = vld [vmem:[#allocation5 + $0x188] sm:$0xff]  ;;  %v326_v32 = vld [vmem:[#allocation5 + $0x78] sm:$0xff] }
  0x44   : > { %405 = vmatpush.msra.mxu1 %v365_v19  ;;  %426 = vmatpush.msra.mxu2 %v332_v20  ;;  %v359_v31 = vld [vmem:[#allocation5 + $0x180] sm:$0xff]  ;;  %v325_v33 = vld [vmem:[#allocation5 + $0x70] sm:$0xff]  ;;  %v358_v34 = vld [vmem:[#allocation5 + $0x178] sm:$0xff]  ;;  %p1982_p5 = pneg %p1981_p3 }
  0x45   : > { %386 = vmatpush.msra.mxu0 %v331_v21  ;;  %446 = vmatpush.msra.mxu3 %v364_v22  ;;  %v357_v35 = vld [vmem:[#allocation5 + $0x170] sm:$0xff]  ;;  %v324_v36 = vld [vmem:[#allocation5 + $0x68] sm:$0xff]  ;;  %v323_v37 = vld [vmem:[#allocation5 + $0x60] sm:$0xff] }
  0x46   : > { %406 = vmatpush.msra.mxu1 %v363_v23  ;;  %427 = vmatpush.msra.mxu2 %v330_v24  ;;  %v356_v38 = vld [vmem:[#allocation5 + $0x168] sm:$0xff]  ;;  %v355_v39 = vld [vmem:[#allocation5 + $0x160] sm:$0xff]  ;;  %v322_v40 = vld [vmem:[#allocation5 + $0x58] sm:$0xff]  ;;  %p1987_p9 = pnand %p1986_p8, %p1982_p5 }
  0x47   : > { %387 = vmatpush.msra.mxu0 %v329_v25  ;;  %447 = vmatpush.msra.mxu3 %v362_v26  ;;  %v321_v41 = vld [vmem:[#allocation5 + $0x50] sm:$0xff]  ;;  %v354_v42 = vld [vmem:[#allocation5 + $0x158] sm:$0xff]  ;;  %v320_v44 = vld [vmem:[#allocation5 + $0x48] sm:$0xff] }
  0x48   : > { %407 = vmatpush.msra.mxu1 %v361_v27  ;;  %428 = vmatpush.msra.mxu2 %v328_v28  ;;  %v353_v43 = vld [vmem:[#allocation5 + $0x150] sm:$0xff]  ;;  %v319_v45 = vld [vmem:[#allocation5 + $0x40] sm:$0xff]  ;;  %v352_v46 = vld [vmem:[#allocation5 + $0x148] sm:$0xff] }
  0x49   : > { %388 = vmatpush.msra.mxu0 %v327_v29  ;;  %448 = vmatpush.msra.mxu3 %v360_v30  ;;  %v351_v47 = vld [vmem:[#allocation5 + $0x140] sm:$0xff]  ;;  %v318_v48 = vld [vmem:[#allocation5 + $0x38] sm:$0xff]  ;;  %v317_v49 = vld [vmem:[#allocation5 + $0x30] sm:$0xff] }
  0x4a   : > { %408 = vmatpush.msra.mxu1 %v359_v31  ;;  %429 = vmatpush.msra.mxu2 %v326_v32  ;;  %v350_v50 = vld [vmem:[#allocation5 + $0x138] sm:$0xff]  ;;  %v349_v51 = vld [vmem:[#allocation5 + $0x130] sm:$0xff]  ;;  %v316_v52 = vld [vmem:[#allocation5 + $0x28] sm:$0xff] }
  0x4b   : > { %389 = vmatpush.msra.mxu0 %v325_v33  ;;  %449 = vmatpush.msra.mxu3 %v358_v34  ;;  %v315_v53 = vld [vmem:[#allocation5 + $0x20] sm:$0xff]  ;;  %v348_v54 = vld [vmem:[#allocation5 + $0x128] sm:$0xff]  ;;  %v314_v56 = vld [vmem:[#allocation5 + $0x18] sm:$0xff] }
  0x4c   : > { %409 = vmatpush.msra.mxu1 %v357_v35  ;;  %430 = vmatpush.msra.mxu2 %v324_v36  ;;  %v347_v55 = vld [vmem:[#allocation5 + $0x120] sm:$0xff]  ;;  %v313_v57 = vld [vmem:[#allocation5 + $0x10] sm:$0xff]  ;;  %v346_v58 = vld [vmem:[#allocation5 + $0x118] sm:$0xff] }
  0x4d   : > { %390 = vmatpush.msra.mxu0 %v323_v37  ;;  %450 = vmatpush.msra.mxu3 %v356_v38  ;;  %v345_v59 = vld [vmem:[#allocation5 + $0x110] sm:$0xff]  ;;  %v312_v60 = vld [vmem:[#allocation5 + $0x8] sm:$0xff]  ;;  %v311_v61 = vld [vmem:[#allocation5] sm:$0xff] }
  0x4e   : > { %410 = vmatpush.msra.mxu1 %v355_v39  ;;  %431 = vmatpush.msra.mxu2 %v322_v40  ;;  %v309_v62 = vld [vmem:[%s2199_s15] sm:$0xff]  ;;  %v344_v63 = vld [vmem:[#allocation5 + $0x108] sm:$0xff]  ;;  %v497_v3 = vld [vmem:[#allocation5 + $0x2f8] sm:$0xff] }
  0x4f   : > { %391 = vmatpush.msra.mxu0 %v321_v41  ;;  %451 = vmatpush.msra.mxu3 %v354_v42  ;;  %v310_v0 = vld [vmem:[%s2199_s15 + $0x8] sm:$0xff]  ;;  %v343_v1 = vld [vmem:[#allocation5 + $0x100] sm:$0xff]  ;;  %v496_v2 = vld [vmem:[#allocation5 + $0x2f0] sm:$0xff] }
  0x50   : > { %411 = vmatpush.msra.mxu1 %v353_v43  ;;  %432 = vmatpush.msra.mxu2 %v320_v44  ;;  %v494_v4 = vld [vmem:[#allocation5 + $0x2e0] sm:$0xff]  ;;  %v528_v5 = vld [vmem:[#allocation5 + $0x3f0] sm:$0xff]  ;;  %v495_v6 = vld [vmem:[#allocation5 + $0x2e8] sm:$0xff] }
  0x51   : > { %392 = vmatpush.msra.mxu0 %v319_v45  ;;  %452 = vmatpush.msra.mxu3 %v352_v46  ;;  %v529_v7 = vld [vmem:[#allocation5 + $0x3f8] sm:$0xff]  ;;  %v492_v8 = vld [vmem:[#allocation5 + $0x2d0] sm:$0xff]  ;;  %v526_v9 = vld [vmem:[#allocation5 + $0x3e0] sm:$0xff] }
  0x52   : > { %412 = vmatpush.msra.mxu1 %v351_v47  ;;  %433 = vmatpush.msra.mxu2 %v318_v48  ;;  %v493_v10 = vld [vmem:[#allocation5 + $0x2d8] sm:$0xff]  ;;  %v527_v11 = vld [vmem:[#allocation5 + $0x3e8] sm:$0xff]  ;;  %v490_v12 = vld [vmem:[#allocation5 + $0x2c0] sm:$0xff] }
  0x53   : > { %393 = vmatpush.msra.mxu0 %v317_v49  ;;  %453 = vmatpush.msra.mxu3 %v350_v50  ;;  %v524_v13 = vld [vmem:[#allocation5 + $0x3d0] sm:$0xff]  ;;  %v491_v14 = vld [vmem:[#allocation5 + $0x2c8] sm:$0xff]  ;;  %v525_v15 = vld [vmem:[#allocation5 + $0x3d8] sm:$0xff] }
  0x54   : > { %413 = vmatpush.msra.mxu1 %v349_v51  ;;  %434 = vmatpush.msra.mxu2 %v316_v52  ;;  %v488_v16 = vld [vmem:[#allocation5 + $0x2b0] sm:$0xff]  ;;  %v522_v17 = vld [vmem:[#allocation5 + $0x3c0] sm:$0xff]  ;;  %v489_v18 = vld [vmem:[#allocation5 + $0x2b8] sm:$0xff] }
  0x55   : > { %394 = vmatpush.msra.mxu0 %v315_v53  ;;  %454 = vmatpush.msra.mxu3 %v348_v54  ;;  %v523_v19 = vld [vmem:[#allocation5 + $0x3c8] sm:$0xff]  ;;  %v486_v20 = vld [vmem:[#allocation5 + $0x2a0] sm:$0xff]  ;;  %v520_v21 = vld [vmem:[#allocation5 + $0x3b0] sm:$0xff] }
  0x56   : > { %414 = vmatpush.msra.mxu1 %v347_v55  ;;  %435 = vmatpush.msra.mxu2 %v314_v56  ;;  %v487_v22 = vld [vmem:[#allocation5 + $0x2a8] sm:$0xff]  ;;  %v521_v23 = vld [vmem:[#allocation5 + $0x3b8] sm:$0xff]  ;;  %v484_v24 = vld [vmem:[#allocation5 + $0x290] sm:$0xff] }
  0x57   : > { %395 = vmatpush.msra.mxu0 %v313_v57  ;;  %455 = vmatpush.msra.mxu3 %v346_v58  ;;  %v518_v25 = vld [vmem:[#allocation5 + $0x3a0] sm:$0xff]  ;;  %v485_v26 = vld [vmem:[#allocation5 + $0x298] sm:$0xff]  ;;  %v519_v27 = vld [vmem:[#allocation5 + $0x3a8] sm:$0xff] }
  0x58   : > { %415 = vmatpush.msra.mxu1 %v345_v59  ;;  %436 = vmatpush.msra.mxu2 %v312_v60  ;;  %v482_v28 = vld [vmem:[#allocation5 + $0x280] sm:$0xff]  ;;  %v516_v29 = vld [vmem:[#allocation5 + $0x390] sm:$0xff]  ;;  %v483_v30 = vld [vmem:[#allocation5 + $0x288] sm:$0xff] }
  0x59   : > { %396 = vmatpush.msra.mxu0 %v311_v61  ;;  %437 = vmatmul.f32.vlgmr.msra.gmra.mxu2 %v309_v62  ;;  %v517_v31 = vld [vmem:[#allocation5 + $0x398] sm:$0xff]  ;;  %v480_v32 = vld [vmem:[#allocation5 + $0x270] sm:$0xff]  ;;  %v514_v33 = vld [vmem:[#allocation5 + $0x380] sm:$0xff] }
  0x5a   : > { %456 = vmatpush.msra.mxu3 %v344_v63  ;;  %397 = vmatmul.f32.vlgmr.msra.gmra.mxu0 %v309_v62  ;;  %v481_v34 = vld [vmem:[#allocation5 + $0x278] sm:$0xff]  ;;  %v515_v35 = vld [vmem:[#allocation5 + $0x388] sm:$0xff]  ;;  %v478_v36 = vld [vmem:[#allocation5 + $0x260] sm:$0xff] }
  0x5b   : > { %457 = vmatmul.f32.vlgmr.msra.gmra.mxu3 %v310_v0  ;;  %416 = vmatpush.msra.mxu1 %v343_v1  ;;  %v512_v37 = vld [vmem:[#allocation5 + $0x370] sm:$0xff]  ;;  %v479_v38 = vld [vmem:[#allocation5 + $0x268] sm:$0xff]  ;;  %v513_v39 = vld [vmem:[#allocation5 + $0x378] sm:$0xff] }
  0x5c   : > { %537 = vmatpush.msrb.mxu0 %v496_v2  ;;  %417 = vmatmul.f32.vlgmr.msra.gmra.mxu1 %v310_v0  ;;  %v476_v40 = vld [vmem:[#allocation5 + $0x250] sm:$0xff]  ;;  %v477_v41 = vld [vmem:[#allocation5 + $0x258] sm:$0xff]  ;;  %v474_v42 = vld [vmem:[#allocation5 + $0x240] sm:$0xff] }
  0x5d   : > { %577 = vmatpush.msrb.mxu2 %v497_v3  ;;  %557 = vmatpush.msrb.mxu1 %v528_v5  ;;  %v510_v43 = vld [vmem:[#allocation5 + $0x360] sm:$0xff]  ;;  %v475_v44 = vld [vmem:[#allocation5 + $0x248] sm:$0xff]  ;;  %v472_v46 = vld [vmem:[#allocation5 + $0x230] sm:$0xff] }
  0x5e   : > { %538 = vmatpush.msrb.mxu0 %v494_v4  ;;  %597 = vmatpush.msrb.mxu3 %v529_v7  ;;  %v511_v45 = vld [vmem:[#allocation5 + $0x368] sm:$0xff]  ;;  %v508_v47 = vld [vmem:[#allocation5 + $0x350] sm:$0xff]  ;;  %v473_v48 = vld [vmem:[#allocation5 + $0x238] sm:$0xff] }
  0x5f   : > { %578 = vmatpush.msrb.mxu2 %v495_v6  ;;  %558 = vmatpush.msrb.mxu1 %v526_v9  ;;  %v509_v49 = vld [vmem:[#allocation5 + $0x358] sm:$0xff]  ;;  %v470_v50 = vld [vmem:[#allocation5 + $0x220] sm:$0xff]  ;;  %v471_v52 = vld [vmem:[#allocation5 + $0x228] sm:$0xff] }
  0x60   : > { %539 = vmatpush.msrb.mxu0 %v492_v8  ;;  %598 = vmatpush.msrb.mxu3 %v527_v11  ;;  %v506_v51 = vld [vmem:[#allocation5 + $0x340] sm:$0xff]  ;;  %v507_v53 = vld [vmem:[#allocation5 + $0x348] sm:$0xff]  ;;  %v468_v54 = vld [vmem:[#allocation5 + $0x210] sm:$0xff] }
  0x61   : > { %579 = vmatpush.msrb.mxu2 %v493_v10  ;;  %559 = vmatpush.msrb.mxu1 %v524_v13  ;;  %v504_v55 = vld [vmem:[#allocation5 + $0x330] sm:$0xff]  ;;  %v469_v56 = vld [vmem:[#allocation5 + $0x218] sm:$0xff]  ;;  %v466_v58 = vld [vmem:[#allocation5 + $0x200] sm:$0xff] }
  0x62   : > { %540 = vmatpush.msrb.mxu0 %v490_v12  ;;  %599 = vmatpush.msrb.mxu3 %v525_v15  ;;  %v505_v57 = vld [vmem:[#allocation5 + $0x338] sm:$0xff]  ;;  %v502_v59 = vld [vmem:[#allocation5 + $0x320] sm:$0xff]  ;;  %v467_v60 = vld [vmem:[#allocation5 + $0x208] sm:$0xff] }
  0x63   : > { %580 = vmatpush.msrb.mxu2 %v491_v14  ;;  %560 = vmatpush.msrb.mxu1 %v522_v17  ;;  %v503_v61 = vld [vmem:[#allocation5 + $0x328] sm:$0xff]  ;;  %v500_v62 = vld [vmem:[#allocation5 + $0x310] sm:$0xff]  ;;  %v501_v63 = vld [vmem:[#allocation5 + $0x318] sm:$0xff] }
  0x64   : > { %541 = vmatpush.msrb.mxu0 %v488_v16  ;;  %600 = vmatpush.msrb.mxu3 %v523_v19  ;;  %v498_v0 = vld [vmem:[#allocation5 + $0x300] sm:$0xff]  ;;  %v499_v1 = vld [vmem:[#allocation5 + $0x308] sm:$0xff]  ;;  %v652_v2 = vld [vmem:[#allocation5 + $0x4f0] sm:$0xff] }
  0x65   : > { %581 = vmatpush.msrb.mxu2 %v489_v18  ;;  %561 = vmatpush.msrb.mxu1 %v520_v21  ;;  %v653_v3 = vld [vmem:[#allocation5 + $0x4f8] sm:$0xff]  ;;  %v650_v4 = vld [vmem:[#allocation5 + $0x4e0] sm:$0xff]  ;;  %v651_v5 = vld [vmem:[#allocation5 + $0x4e8] sm:$0xff] }
  0x66   : > { %542 = vmatpush.msrb.mxu0 %v486_v20  ;;  %601 = vmatpush.msrb.mxu3 %v521_v23  ;;  %v648_v6 = vld [vmem:[#allocation5 + $0x4d0] sm:$0xff]  ;;  %v649_v7 = vld [vmem:[#allocation5 + $0x4d8] sm:$0xff]  ;;  %v682_v10 = vld [vmem:[#allocation5 + $0x5e0] sm:$0xff] }
  0x67   : > { %582 = vmatpush.msrb.mxu2 %v487_v22  ;;  %562 = vmatpush.msrb.mxu1 %v518_v25  ;;  %v684_v8 = vld [vmem:[#allocation5 + $0x5f0] sm:$0xff]  ;;  %v685_v9 = vld [vmem:[#allocation5 + $0x5f8] sm:$0xff]  ;;  %v646_v11 = vld [vmem:[#allocation5 + $0x4c0] sm:$0xff] }
  0x68   : > { %543 = vmatpush.msrb.mxu0 %v484_v24  ;;  %602 = vmatpush.msrb.mxu3 %v519_v27  ;;  %v647_v12 = vld [vmem:[#allocation5 + $0x4c8] sm:$0xff]  ;;  %v680_v14 = vld [vmem:[#allocation5 + $0x5d0] sm:$0xff]  ;;  %v681_v15 = vld [vmem:[#allocation5 + $0x5d8] sm:$0xff] }
  0x69   : > { %583 = vmatpush.msrb.mxu2 %v485_v26  ;;  %563 = vmatpush.msrb.mxu1 %v516_v29  ;;  %v683_v13 = vld [vmem:[#allocation5 + $0x5e8] sm:$0xff]  ;;  %v644_v16 = vld [vmem:[#allocation5 + $0x4b0] sm:$0xff]  ;;  %v645_v17 = vld [vmem:[#allocation5 + $0x4b8] sm:$0xff] }
  0x6a   : > { %544 = vmatpush.msrb.mxu0 %v482_v28  ;;  %603 = vmatpush.msrb.mxu3 %v517_v31  ;;  %v678_v18 = vld [vmem:[#allocation5 + $0x5c0] sm:$0xff]  ;;  %v679_v19 = vld [vmem:[#allocation5 + $0x5c8] sm:$0xff]  ;;  %v676_v22 = vld [vmem:[#allocation5 + $0x5b0] sm:$0xff] }
  0x6b   : > { %584 = vmatpush.msrb.mxu2 %v483_v30  ;;  %564 = vmatpush.msrb.mxu1 %v514_v33  ;;  %v642_v20 = vld [vmem:[#allocation5 + $0x4a0] sm:$0xff]  ;;  %v643_v21 = vld [vmem:[#allocation5 + $0x4a8] sm:$0xff]  ;;  %v677_v23 = vld [vmem:[#allocation5 + $0x5b8] sm:$0xff] }
  0x6c   : > { %545 = vmatpush.msrb.mxu0 %v480_v32  ;;  %604 = vmatpush.msrb.mxu3 %v515_v35  ;;  %v640_v24 = vld [vmem:[#allocation5 + $0x490] sm:$0xff]  ;;  %v641_v25 = vld [vmem:[#allocation5 + $0x498] sm:$0xff]  ;;  %v674_v26 = vld [vmem:[#allocation5 + $0x5a0] sm:$0xff] }
  0x6d   : > { %585 = vmatpush.msrb.mxu2 %v481_v34  ;;  %565 = vmatpush.msrb.mxu1 %v512_v37  ;;  %v675_v27 = vld [vmem:[#allocation5 + $0x5a8] sm:$0xff]  ;;  %v375_v28 = vld [vmem:[#allocation7] sm:$0x3]  ;;  %v672_v31 = vld [vmem:[#allocation5 + $0x590] sm:$0xff] }
  0x6e   : > { %546 = vmatpush.msrb.mxu0 %v478_v36  ;;  %605 = vmatpush.msrb.mxu3 %v513_v39  ;;  %v638_v29 = vld [vmem:[#allocation5 + $0x480] sm:$0xff]  ;;  %v639_v30 = vld [vmem:[#allocation5 + $0x488] sm:$0xff]  ;;  %v673_v32 = vld [vmem:[#allocation5 + $0x598] sm:$0xff]  ;;  %v377_v35 = vperm.slane %v375_v28, 0 }
  0x6f   : > { %586 = vmatpush.msrb.mxu2 %v479_v38  ;;  %566 = vmatpush.msrb.mxu1 %v510_v43  ;;  %v636_v33 = vld [vmem:[#allocation5 + $0x470] sm:$0xff]  ;;  %v637_v34 = vld [vmem:[#allocation5 + $0x478] sm:$0xff]  ;;  %v634_v36 = vld [vmem:[#allocation5 + $0x460] sm:$0xff] }
  0x70   : > { %547 = vmatpush.msrb.mxu0 %v476_v40  ;;  %606 = vmatpush.msrb.mxu3 %v511_v45  ;;  %v635_v37 = vld [vmem:[#allocation5 + $0x468] sm:$0xff] }
  0x71   : > { %587 = vmatpush.msrb.mxu2 %v477_v41  ;;  %567 = vmatpush.msrb.mxu1 %v508_v47  ;;  %v378_v41 = vperm.slane %v375_v28, 1  ;;  %v839_v28 = vld [vmem:[#allocation5 + $0x7e8] sm:$0xff] }
  0x72   : > { %548 = vmatpush.msrb.mxu0 %v474_v42  ;;  %607 = vmatpush.msrb.mxu3 %v509_v49 }
  0x73   : > { %588 = vmatpush.msrb.mxu2 %v475_v44  ;;  %568 = vmatpush.msrb.mxu1 %v506_v51  ;;  %v632_v51 = vld [vmem:[#allocation5 + $0x450] sm:$0xff] }
  0x74   : > { %549 = vmatpush.msrb.mxu0 %v472_v46  ;;  %608 = vmatpush.msrb.mxu3 %v507_v53  ;;  %v633_v53 = vld [vmem:[#allocation5 + $0x458] sm:$0xff] }
  0x75   : > { %589 = vmatpush.msrb.mxu2 %v473_v48  ;;  %569 = vmatpush.msrb.mxu1 %v504_v55  ;;  %v630_v55 = vld [vmem:[#allocation5 + $0x440] sm:$0xff] }
  0x76   : > { %550 = vmatpush.msrb.mxu0 %v470_v50  ;;  %609 = vmatpush.msrb.mxu3 %v505_v57  ;;  %v631_v57 = vld [vmem:[#allocation5 + $0x448] sm:$0xff] }
  0x77   : > { %590 = vmatpush.msrb.mxu2 %v471_v52  ;;  %570 = vmatpush.msrb.mxu1 %v502_v59  ;;  %v670_v52 = vld [vmem:[#allocation5 + $0x580] sm:$0xff]  ;;  %v628_v59 = vld [vmem:[#allocation5 + $0x430] sm:$0xff] }
  0x78   : > { %551 = vmatpush.msrb.mxu0 %v468_v54  ;;  %610 = vmatpush.msrb.mxu3 %v503_v61  ;;  %v671_v54 = vld [vmem:[#allocation5 + $0x588] sm:$0xff]  ;;  %v629_v61 = vld [vmem:[#allocation5 + $0x438] sm:$0xff] }
  0x79   : > { %591 = vmatpush.msrb.mxu2 %v469_v56  ;;  %571 = vmatpush.msrb.mxu1 %v500_v62  ;;  %v668_v56 = vld [vmem:[#allocation5 + $0x570] sm:$0xff]  ;;  %v667_v62 = vld [vmem:[#allocation5 + $0x568] sm:$0xff] }
  0x7a   : > { %552 = vmatpush.msrb.mxu0 %v466_v58  ;;  %611 = vmatpush.msrb.mxu3 %v501_v63  ;;  %v669_v58 = vld [vmem:[#allocation5 + $0x578] sm:$0xff]  ;;  %v626_v63 = vld [vmem:[#allocation5 + $0x420] sm:$0xff] }
  0x7b   : > { %592 = vmatpush.msrb.mxu2 %v467_v60  ;;  %572 = vmatpush.msrb.mxu1 %v498_v0  ;;  %v666_v60 = vld [vmem:[#allocation5 + $0x560] sm:$0xff]  ;;  %v664_v0 = vld [vmem:[#allocation5 + $0x550] sm:$0xff] }
  0x7c   : > { %612 = vmatpush.msrb.mxu3 %v499_v1  ;;  %693 = vmatpush.msra.mxu0 %v652_v2  ;;  %v627_v1 = vld [vmem:[#allocation5 + $0x428] sm:$0xff]  ;;  %v665_v2 = vld [vmem:[#allocation5 + $0x558] sm:$0xff] }
  0x7d   : > { %733 = vmatpush.msra.mxu2 %v653_v3  ;;  %713 = vmatpush.msra.mxu1 %v684_v8  ;;  %v624_v3 = vld [vmem:[#allocation5 + $0x410] sm:$0xff] }
  0x7e   : > { %694 = vmatpush.msra.mxu0 %v650_v4  ;;  %753 = vmatpush.msra.mxu3 %v685_v9  ;;  %v662_v4 = vld [vmem:[#allocation5 + $0x540] sm:$0xff]  ;;  %v660_v8 = vld [vmem:[#allocation5 + $0x530] sm:$0xff]  ;;  %v623_v9 = vld [vmem:[#allocation5 + $0x408] sm:$0xff] }
  0x7f   : > { %734 = vmatpush.msra.mxu2 %v651_v5  ;;  %714 = vmatpush.msra.mxu1 %v682_v10  ;;  %v625_v5 = vld [vmem:[#allocation5 + $0x418] sm:$0xff] }
  0x80   : > { %695 = vmatpush.msra.mxu0 %v648_v6  ;;  %754 = vmatpush.msra.mxu3 %v683_v13  ;;  %v663_v6 = vld [vmem:[#allocation5 + $0x548] sm:$0xff]  ;;  %v661_v10 = vld [vmem:[#allocation5 + $0x538] sm:$0xff]  ;;  %v656_v13 = vld [vmem:[#allocation5 + $0x510] sm:$0xff] }
  0x81   : > { %735 = vmatpush.msra.mxu2 %v649_v7  ;;  %715 = vmatpush.msra.mxu1 %v680_v14  ;;  %v622_v7 = vld [vmem:[#allocation5 + $0x400] sm:$0xff]  ;;  %v657_v14 = vld [vmem:[#allocation5 + $0x518] sm:$0xff] }
  0x82   : > { %696 = vmatpush.msra.mxu0 %v646_v11  ;;  %755 = vmatpush.msra.mxu3 %v681_v15  ;;  %v658_v11 = vld [vmem:[#allocation5 + $0x520] sm:$0xff] }
  0x83   : > { %736 = vmatpush.msra.mxu2 %v647_v12  ;;  %716 = vmatpush.msra.mxu1 %v678_v18  ;;  %v659_v12 = vld [vmem:[#allocation5 + $0x528] sm:$0xff]  ;;  %v654_v15 = vld [vmem:[#allocation5 + $0x500] sm:$0xff]  ;;  %v809_v18 = vld [vmem:[#allocation5 + $0x6f8] sm:$0xff] }
  0x84   : > { %697 = vmatpush.msra.mxu0 %v644_v16  ;;  %756 = vmatpush.msra.mxu3 %v679_v19  ;;  %v655_v16 = vld [vmem:[#allocation5 + $0x508] sm:$0xff]  ;;  %v806_v19 = vld [vmem:[#allocation5 + $0x6e0] sm:$0xff] }
  0x85   : > { %737 = vmatpush.msra.mxu2 %v645_v17  ;;  %717 = vmatpush.msra.mxu1 %v676_v22  ;;  %v808_v17 = vld [vmem:[#allocation5 + $0x6f0] sm:$0xff]  ;;  %v805_v22 = vld [vmem:[#allocation5 + $0x6d8] sm:$0xff] }
  0x86   : > { %698 = vmatpush.msra.mxu0 %v642_v20  ;;  %757 = vmatpush.msra.mxu3 %v677_v23  ;;  %v807_v20 = vld [vmem:[#allocation5 + $0x6e8] sm:$0xff]  ;;  %v840_v23 = vld [vmem:[#allocation5 + $0x7f0] sm:$0xff] }
  0x87   : > { %738 = vmatpush.msra.mxu2 %v643_v21  ;;  %718 = vmatpush.msra.mxu1 %v674_v26  ;;  %v804_v21 = vld [vmem:[#allocation5 + $0x6d0] sm:$0xff]  ;;  %v802_v26 = vld [vmem:[#allocation5 + $0x6c0] sm:$0xff] }
  0x88   : > { %699 = vmatpush.msra.mxu0 %v640_v24  ;;  %758 = vmatpush.msra.mxu3 %v675_v27  ;;  %v841_v24 = vld [vmem:[#allocation5 + $0x7f8] sm:$0xff]  ;;  %v803_v27 = vld [vmem:[#allocation5 + $0x6c8] sm:$0xff] }
  0x89   : > { %739 = vmatpush.msra.mxu2 %v641_v25  ;;  %719 = vmatpush.msra.mxu1 %v672_v31  ;;  %v838_v25 = vld [vmem:[#allocation5 + $0x7e0] sm:$0xff]  ;;  %v800_v31 = vld [vmem:[#allocation5 + $0x6b0] sm:$0xff] }
  0x8a   : > { %700 = vmatpush.msra.mxu0 %v638_v29  ;;  %759 = vmatpush.msra.mxu3 %v673_v32  ;;  %v836_v29 = vld [vmem:[#allocation5 + $0x7d0] sm:$0xff]  ;;  %v801_v32 = vld [vmem:[#allocation5 + $0x6b8] sm:$0xff] }
  0x8b   : > { %740 = vmatpush.msra.mxu2 %v639_v30  ;;  %720 = vmatpush.msra.mxu1 %v670_v52  ;;  %v837_v30 = vld [vmem:[#allocation5 + $0x7d8] sm:$0xff] }
  0x8c   : > { %701 = vmatpush.msra.mxu0 %v636_v33  ;;  %760 = vmatpush.msra.mxu3 %v671_v54  ;;  %v834_v33 = vld [vmem:[#allocation5 + $0x7c0] sm:$0xff] }
  0x8d   : > { %741 = vmatpush.msra.mxu2 %v637_v34  ;;  %721 = vmatpush.msra.mxu1 %v668_v56  ;;  %v835_v34 = vld [vmem:[#allocation5 + $0x7c8] sm:$0xff] }
  0x8e   : > { %702 = vmatpush.msra.mxu0 %v634_v36  ;;  %761 = vmatpush.msra.mxu3 %v669_v58  ;;  %v799_v36 = vld [vmem:[#allocation5 + $0x6a8] sm:$0xff] }
  0x8f   : > { %742 = vmatpush.msra.mxu2 %v635_v37  ;;  %722 = vmatpush.msra.mxu1 %v666_v60  ;;  %v832_v37 = vld [vmem:[#allocation5 + $0x7b0] sm:$0xff] }
  0x90   : > { %703 = vmatpush.msra.mxu0 %v632_v51  ;;  %762 = vmatpush.msra.mxu3 %v667_v62  ;;  %v790_v62 = vld [vmem:[#allocation5 + $0x660] sm:$0xff] }
  0x91   : > { %743 = vmatpush.msra.mxu2 %v633_v53  ;;  %723 = vmatpush.msra.mxu1 %v664_v0  ;;  %v791_v0 = vld [vmem:[#allocation5 + $0x668] sm:$0xff] }
  0x92   : > { %704 = vmatpush.msra.mxu0 %v630_v55  ;;  %763 = vmatpush.msra.mxu3 %v665_v2  ;;  %v788_v2 = vld [vmem:[#allocation5 + $0x650] sm:$0xff] }
  0x93   : > { %744 = vmatpush.msra.mxu2 %v631_v57  ;;  %724 = vmatpush.msra.mxu1 %v662_v4  ;;  %v789_v4 = vld [vmem:[#allocation5 + $0x658] sm:$0xff] }
  0x94   : > { %705 = vmatpush.msra.mxu0 %v628_v59  ;;  %764 = vmatpush.msra.mxu3 %v663_v6  ;;  %v786_v6 = vld [vmem:[#allocation5 + $0x640] sm:$0xff] }
  0x95   : > { %745 = vmatpush.msra.mxu2 %v629_v61  ;;  %725 = vmatpush.msra.mxu1 %v660_v8  ;;  %v787_v8 = vld [vmem:[#allocation5 + $0x648] sm:$0xff] }
  0x96   : > { %706 = vmatpush.msra.mxu0 %v626_v63  ;;  %765 = vmatpush.msra.mxu3 %v661_v10  ;;  %v828_v63 = vld [vmem:[#allocation5 + $0x790] sm:$0xff] }
  0x97   : > { %746 = vmatpush.msra.mxu2 %v627_v1  ;;  %726 = vmatpush.msra.mxu1 %v658_v11  ;;  %v829_v1 = vld [vmem:[#allocation5 + $0x798] sm:$0xff]  ;;  %v784_v10 = vld [vmem:[#allocation5 + $0x630] sm:$0xff]  ;;  %v822_v11 = vld [vmem:[#allocation5 + $0x760] sm:$0xff] }
  0x98   : > { %707 = vmatpush.msra.mxu0 %v624_v3  ;;  %766 = vmatpush.msra.mxu3 %v659_v12  ;;  %v826_v3 = vld [vmem:[#allocation5 + $0x780] sm:$0xff]  ;;  %v785_v12 = vld [vmem:[#allocation5 + $0x638] sm:$0xff] }
  0x99   : > { %747 = vmatpush.msra.mxu2 %v625_v5  ;;  %727 = vmatpush.msra.mxu1 %v656_v13  ;;  %v827_v5 = vld [vmem:[#allocation5 + $0x788] sm:$0xff] }
  0x9a   : > { %708 = vmatpush.msra.mxu0 %v622_v7  ;;  %767 = vmatpush.msra.mxu3 %v657_v14  ;;  %v824_v7 = vld [vmem:[#allocation5 + $0x770] sm:$0xff]  ;;  %v823_v13 = vld [vmem:[#allocation5 + $0x768] sm:$0xff]  ;;  %v782_v14 = vld [vmem:[#allocation5 + $0x620] sm:$0xff] }
  0x9b   : > { %748 = vmatpush.msra.mxu2 %v623_v9  ;;  %728 = vmatpush.msra.mxu1 %v654_v15  ;;  %v825_v9 = vld [vmem:[#allocation5 + $0x778] sm:$0xff]  ;;  %v820_v15 = vld [vmem:[#allocation5 + $0x750] sm:$0xff] }
  0x9c   : > { %768 = vmatpush.msra.mxu3 %v655_v16  ;;  %v783_v16 = vld [vmem:[#allocation5 + $0x628] sm:$0xff] }
  0xd7   : > { %v398_v38 = vpop.f32.mrf.mxu0 }
  0xd8   : > { %v399_v39 = vadd.f32 %v398_v38, %v377_v35  ;;  %v798_v35 = vld [vmem:[#allocation5 + $0x6a0] sm:$0xff]  ;;  %v833_v38 = vld [vmem:[#allocation5 + $0x7b8] sm:$0xff] }
  0xd9   : > { %v418_v40 = vpop.f32.mrf.mxu1 }
  0xda   : > { %v419_v42 = vadd.f32 %v418_v40, %v399_v39  ;;  %v796_v39 = vld [vmem:[#allocation5 + $0x690] sm:$0xff]  ;;  %v797_v40 = vld [vmem:[#allocation5 + $0x698] sm:$0xff] }
  0xdc   : > { %v461_v43 = vmul.f32 0.01, %v419_v42  ;;  %v438_v44 = vpop.f32.mrf.mxu2 }
  0xdd   : > { %v439_v45 = vadd.f32 %v438_v44, %v378_v41  ;;  %v531_v41 = vld [vmem:[#allocation7 + $0x2] sm:$0x3] }
  0xde   : > { %v458_v46 = vpop.f32.mrf.mxu3  ;;  %v463_v47 = vmax.f32 %v419_v42, %v461_v43  ;;  %v830_v42 = vld [vmem:[#allocation5 + $0x7a0] sm:$0xff]  ;;  %v831_v43 = vld [vmem:[#allocation5 + $0x7a8] sm:$0xff]  ;;  %v534_v53 = vperm.slane %v531_v41, 1 }
  0xdf   : > { %v459_v48 = vadd.f32 %v458_v46, %v439_v45  ;;  %v794_v44 = vld [vmem:[#allocation5 + $0x680] sm:$0xff]  ;;  %v795_v45 = vld [vmem:[#allocation5 + $0x688] sm:$0xff]  ;;  %v533_v46 = vperm.slane %v531_v41, 0 }
  0xe0   : > { %553 = vmatmul.f32.vlgmr.msrb.gmra.mxu0 %v463_v47  ;;  %593 = vmatmul.f32.vlgmr.msrb.gmra.mxu2 %v463_v47  ;;  %v792_v47 = vld [vmem:[#allocation5 + $0x670] sm:$0xff] }
  0xe1   : > { %v462_v49 = vmul.f32 0.01, %v459_v48  ;;  %849 = vmatpush.msrb.mxu0 %v808_v17  ;;  %889 = vmatpush.msrb.mxu2 %v809_v18  ;;  %v821_v17 = vld [vmem:[#allocation5 + $0x758] sm:$0xff]  ;;  %v780_v18 = vld [vmem:[#allocation5 + $0x610] sm:$0xff] }
  0xe3   : > { %v464_v50 = vmax.f32 %v459_v48, %v462_v49  ;;  %850 = vmatpush.msrb.mxu0 %v806_v19  ;;  %890 = vmatpush.msrb.mxu2 %v807_v20  ;;  %v793_v48 = vld [vmem:[#allocation5 + $0x678] sm:$0xff]  ;;  %v818_v19 = vld [vmem:[#allocation5 + $0x740] sm:$0xff] }
  0xe4   : > { %v781_v20 = vld [vmem:[#allocation5 + $0x618] sm:$0xff] }
  0xe5   : > { %573 = vmatmul.f32.vlgmr.msrb.gmra.mxu1 %v464_v50  ;;  %613 = vmatmul.f32.vlgmr.msrb.gmra.mxu3 %v464_v50 }
  0xe6   : > { %869 = vmatpush.msrb.mxu1 %v840_v23  ;;  %909 = vmatpush.msrb.mxu3 %v841_v24  ;;  %v816_v23 = vld [vmem:[#allocation5 + $0x730] sm:$0xff]  ;;  %v779_v24 = vld [vmem:[#allocation5 + $0x608] sm:$0xff] }
  0xe7   : > { %851 = vmatpush.msrb.mxu0 %v804_v21  ;;  %891 = vmatpush.msrb.mxu2 %v805_v22  ;;  %v819_v21 = vld [vmem:[#allocation5 + $0x748] sm:$0xff]  ;;  %v778_v22 = vld [vmem:[#allocation5 + $0x600] sm:$0xff] }
  0xe8   : > { %870 = vmatpush.msrb.mxu1 %v838_v25  ;;  %910 = vmatpush.msrb.mxu3 %v839_v28  ;;  %v817_v25 = vld [vmem:[#allocation5 + $0x738] sm:$0xff]  ;;  %v812_v28 = vld [vmem:[#allocation5 + $0x710] sm:$0xff] }
  0xe9   : > { %852 = vmatpush.msrb.mxu0 %v802_v26  ;;  %892 = vmatpush.msrb.mxu2 %v803_v27  ;;  %v814_v26 = vld [vmem:[#allocation5 + $0x720] sm:$0xff]  ;;  %v815_v27 = vld [vmem:[#allocation5 + $0x728] sm:$0xff] }
  0xea   : > { %871 = vmatpush.msrb.mxu1 %v836_v29  ;;  %911 = vmatpush.msrb.mxu3 %v837_v30  ;;  %v813_v29 = vld [vmem:[#allocation5 + $0x718] sm:$0xff]  ;;  %v810_v30 = vld [vmem:[#allocation5 + $0x700] sm:$0xff] }
  0xeb   : > { %853 = vmatpush.msrb.mxu0 %v800_v31  ;;  %893 = vmatpush.msrb.mxu2 %v801_v32  ;;  %v811_v31 = vld [vmem:[#allocation5 + $0x708] sm:$0xff]  ;;  %v966_v32 = vld [vmem:[#allocation8 + $0xf0] sm:$0xff] }
  0xec   : > { %872 = vmatpush.msrb.mxu1 %v834_v33  ;;  %912 = vmatpush.msrb.mxu3 %v835_v34  ;;  %v967_v33 = vld [vmem:[#allocation8 + $0xf8] sm:$0xff] }
  0xed   : > { %854 = vmatpush.msrb.mxu0 %v798_v35  ;;  %894 = vmatpush.msrb.mxu2 %v799_v36  ;;  %v687_v34 = vld [vmem:[#allocation7 + $0x4] sm:$0x3] }
  0xee   : > { %873 = vmatpush.msrb.mxu1 %v832_v37  ;;  %913 = vmatpush.msrb.mxu3 %v833_v38  ;;  %v689_v35 = vperm.slane %v687_v34, 0 }
  0xef   : > { %855 = vmatpush.msrb.mxu0 %v796_v39  ;;  %895 = vmatpush.msrb.mxu2 %v797_v40  ;;  %v690_v40 = vperm.slane %v687_v34, 1  ;;  %v974_v34 = vld [vmem:[#allocation8 + $0x130] sm:$0xff] }
  0xf0   : > { %874 = vmatpush.msrb.mxu1 %v830_v42  ;;  %914 = vmatpush.msrb.mxu3 %v831_v43 }
  0xf1   : > { %856 = vmatpush.msrb.mxu0 %v794_v44  ;;  %896 = vmatpush.msrb.mxu2 %v795_v45 }
  0xf2   : > { %875 = vmatpush.msrb.mxu1 %v828_v63  ;;  %915 = vmatpush.msrb.mxu3 %v829_v1  ;;  %v959_v63 = vld [vmem:[#allocation8 + $0xb8] sm:$0xff]  ;;  %v956_v1 = vld [vmem:[#allocation8 + $0xa0] sm:$0xff] }
  0xf3   : > { %857 = vmatpush.msrb.mxu0 %v792_v47  ;;  %897 = vmatpush.msrb.mxu2 %v793_v48 }
  0xf4   : > { %876 = vmatpush.msrb.mxu1 %v826_v3  ;;  %916 = vmatpush.msrb.mxu3 %v827_v5  ;;  %v957_v3 = vld [vmem:[#allocation8 + $0xa8] sm:$0xff]  ;;  %v954_v5 = vld [vmem:[#allocation8 + $0x90] sm:$0xff] }
  0xf5   : > { %858 = vmatpush.msrb.mxu0 %v790_v62  ;;  %898 = vmatpush.msrb.mxu2 %v791_v0  ;;  %v992_v62 = vld [vmem:[#allocation8 + $0x1c0] sm:$0xff]  ;;  %v993_v0 = vld [vmem:[#allocation8 + $0x1c8] sm:$0xff] }
  0xf6   : > { %877 = vmatpush.msrb.mxu1 %v824_v7  ;;  %917 = vmatpush.msrb.mxu3 %v825_v9  ;;  %v955_v7 = vld [vmem:[#allocation8 + $0x98] sm:$0xff]  ;;  %v952_v9 = vld [vmem:[#allocation8 + $0x80] sm:$0xff] }
  0xf7   : > { %859 = vmatpush.msrb.mxu0 %v788_v2  ;;  %899 = vmatpush.msrb.mxu2 %v789_v4  ;;  %v990_v2 = vld [vmem:[#allocation8 + $0x1b0] sm:$0xff]  ;;  %v991_v4 = vld [vmem:[#allocation8 + $0x1b8] sm:$0xff] }
  0xf8   : > { %878 = vmatpush.msrb.mxu1 %v822_v11  ;;  %918 = vmatpush.msrb.mxu3 %v823_v13  ;;  %v953_v11 = vld [vmem:[#allocation8 + $0x88] sm:$0xff]  ;;  %v950_v13 = vld [vmem:[#allocation8 + $0x70] sm:$0xff] }
  0xf9   : > { %860 = vmatpush.msrb.mxu0 %v786_v6  ;;  %900 = vmatpush.msrb.mxu2 %v787_v8  ;;  %v988_v6 = vld [vmem:[#allocation8 + $0x1a0] sm:$0xff]  ;;  %v989_v8 = vld [vmem:[#allocation8 + $0x1a8] sm:$0xff] }
  0xfa   : > { %879 = vmatpush.msrb.mxu1 %v820_v15  ;;  %919 = vmatpush.msrb.mxu3 %v821_v17  ;;  %v951_v15 = vld [vmem:[#allocation8 + $0x78] sm:$0xff]  ;;  %v948_v17 = vld [vmem:[#allocation8 + $0x60] sm:$0xff] }
  0xfb   : > { %861 = vmatpush.msrb.mxu0 %v784_v10  ;;  %901 = vmatpush.msrb.mxu2 %v785_v12  ;;  %v986_v10 = vld [vmem:[#allocation8 + $0x190] sm:$0xff]  ;;  %v987_v12 = vld [vmem:[#allocation8 + $0x198] sm:$0xff] }
  0xfc   : > { %880 = vmatpush.msrb.mxu1 %v818_v19  ;;  %920 = vmatpush.msrb.mxu3 %v819_v21  ;;  %v949_v19 = vld [vmem:[#allocation8 + $0x68] sm:$0xff]  ;;  %v946_v21 = vld [vmem:[#allocation8 + $0x50] sm:$0xff] }
  0xfd   : > { %862 = vmatpush.msrb.mxu0 %v782_v14  ;;  %902 = vmatpush.msrb.mxu2 %v783_v16  ;;  %v984_v14 = vld [vmem:[#allocation8 + $0x180] sm:$0xff]  ;;  %v985_v16 = vld [vmem:[#allocation8 + $0x188] sm:$0xff] }
  0xfe   : > { %881 = vmatpush.msrb.mxu1 %v816_v23  ;;  %921 = vmatpush.msrb.mxu3 %v817_v25  ;;  %v947_v23 = vld [vmem:[#allocation8 + $0x58] sm:$0xff]  ;;  %v944_v25 = vld [vmem:[#allocation8 + $0x40] sm:$0xff] }
  0xff   : > { %863 = vmatpush.msrb.mxu0 %v780_v18  ;;  %903 = vmatpush.msrb.mxu2 %v781_v20  ;;  %v982_v18 = vld [vmem:[#allocation8 + $0x170] sm:$0xff]  ;;  %v983_v20 = vld [vmem:[#allocation8 + $0x178] sm:$0xff] }
 0x100   : > { %882 = vmatpush.msrb.mxu1 %v814_v26  ;;  %922 = vmatpush.msrb.mxu3 %v815_v27  ;;  %v978_v26 = vld [vmem:[#allocation8 + $0x150] sm:$0xff]  ;;  %v945_v27 = vld [vmem:[#allocation8 + $0x48] sm:$0xff] }
 0x101   : > { %864 = vmatpush.msrb.mxu0 %v778_v22  ;;  %904 = vmatpush.msrb.mxu2 %v779_v24  ;;  %v980_v22 = vld [vmem:[#allocation8 + $0x160] sm:$0xff]  ;;  %v981_v24 = vld [vmem:[#allocation8 + $0x168] sm:$0xff] }
 0x102   : > { %883 = vmatpush.msrb.mxu1 %v812_v28  ;;  %923 = vmatpush.msrb.mxu3 %v813_v29  ;;  %v979_v28 = vld [vmem:[#allocation8 + $0x158] sm:$0xff]  ;;  %v942_v29 = vld [vmem:[#allocation8 + $0x30] sm:$0xff] }
 0x104   : > { %884 = vmatpush.msrb.mxu1 %v810_v30  ;;  %924 = vmatpush.msrb.mxu3 %v811_v31  ;;  %v976_v30 = vld [vmem:[#allocation8 + $0x140] sm:$0xff]  ;;  %v943_v31 = vld [vmem:[#allocation8 + $0x38] sm:$0xff] }
 0x15d   : > { %v554_v49 = vpop.f32.mrf.mxu0 }
 0x15e   : > { %v555_v50 = vadd.f32 %v554_v49, %v533_v46  ;;  %v964_v49 = vld [vmem:[#allocation8 + $0xe0] sm:$0xff] }
 0x162   : > { %v574_v51 = vpop.f32.mrf.mxu1 }
 0x163   : > { %v575_v52 = vadd.f32 %v574_v51, %v555_v50  ;;  %v594_v54 = vpop.f32.mrf.mxu2  ;;  %v998_v50 = vld [vmem:[#allocation8 + $0x1f0] sm:$0xff]  ;;  %v965_v51 = vld [vmem:[#allocation8 + $0xe8] sm:$0xff] }
 0x164   : > { %v595_v57 = vadd.f32 %v594_v54, %v534_v53  ;;  %v962_v53 = vld [vmem:[#allocation8 + $0xd0] sm:$0xff]  ;;  %v996_v54 = vld [vmem:[#allocation8 + $0x1e0] sm:$0xff] }
 0x165   : > { %v617_v55 = vmul.f32 0.01, %v575_v52 }
 0x167   : > { %v619_v56 = vmax.f32 %v575_v52, %v617_v55  ;;  %v999_v52 = vld [vmem:[#allocation8 + $0x1f8] sm:$0xff] }
 0x168   : > { %v614_v58 = vpop.f32.mrf.mxu3  ;;  %v963_v55 = vld [vmem:[#allocation8 + $0xd8] sm:$0xff] }
 0x169   : > { %v615_v59 = vadd.f32 %v614_v58, %v595_v57  ;;  %709 = vmatmul.f32.vlgmr.msra.gmra.mxu0 %v619_v56  ;;  %749 = vmatmul.f32.vlgmr.msra.gmra.mxu2 %v619_v56  ;;  %v997_v56 = vld [vmem:[#allocation8 + $0x1e8] sm:$0xff]  ;;  %v960_v57 = vld [vmem:[#allocation8 + $0xc0] sm:$0xff]  ;;  %v994_v58 = vld [vmem:[#allocation8 + $0x1d0] sm:$0xff] }
 0x16a   : > { %1006 = vmatpush.msra.mxu0 %v966_v32  ;;  %1046 = vmatpush.msra.mxu2 %v967_v33  ;;  %v977_v32 = vld [vmem:[#allocation8 + $0x148] sm:$0xff]  ;;  %v940_v33 = vld [vmem:[#allocation8 + $0x20] sm:$0xff] }
 0x16b   : > { %v618_v60 = vmul.f32 0.01, %v615_v59 }
 0x16c   : > { %1007 = vmatpush.msra.mxu0 %v964_v49  ;;  %1047 = vmatpush.msra.mxu2 %v965_v51 }
 0x16d   : > { %v620_v61 = vmax.f32 %v615_v59, %v618_v60  ;;  %v961_v59 = vld [vmem:[#allocation8 + $0xc8] sm:$0xff]  ;;  %v995_v60 = vld [vmem:[#allocation8 + $0x1d8] sm:$0xff] }
 0x16e   : > { %1008 = vmatpush.msra.mxu0 %v962_v53  ;;  %1048 = vmatpush.msra.mxu2 %v963_v55 }
 0x16f   : > { %729 = vmatmul.f32.vlgmr.msra.gmra.mxu1 %v620_v61  ;;  %769 = vmatmul.f32.vlgmr.msra.gmra.mxu3 %v620_v61  ;;  %v958_v61 = vld [vmem:[#allocation8 + $0xb0] sm:$0xff] }
 0x170   : > { %1026 = vmatpush.msra.mxu1 %v998_v50  ;;  %1066 = vmatpush.msra.mxu3 %v999_v52 }
 0x171   : > { %1009 = vmatpush.msra.mxu0 %v960_v57  ;;  %1049 = vmatpush.msra.mxu2 %v961_v59 }
 0x172   : > { %1027 = vmatpush.msra.mxu1 %v996_v54  ;;  %1067 = vmatpush.msra.mxu3 %v997_v56 }
 0x173   : > { %1010 = vmatpush.msra.mxu0 %v958_v61  ;;  %1050 = vmatpush.msra.mxu2 %v959_v63 }
 0x174   : > { %1028 = vmatpush.msra.mxu1 %v994_v58  ;;  %1068 = vmatpush.msra.mxu3 %v995_v60 }
 0x175   : > { %1011 = vmatpush.msra.mxu0 %v956_v1  ;;  %1051 = vmatpush.msra.mxu2 %v957_v3  ;;  %v1121_v1 = vld [vmem:[#allocation8 + $0x2f0] sm:$0xff]  ;;  %v1119_v3 = vld [vmem:[#allocation8 + $0x2e0] sm:$0xff] }
 0x176   : > { %1029 = vmatpush.msra.mxu1 %v992_v62  ;;  %1069 = vmatpush.msra.mxu3 %v993_v0  ;;  %v1812_v62 = vld [vmem:[%s2199_s15 + $0x8] sm:$0xff] }
 0x177   : > { %1012 = vmatpush.msra.mxu0 %v954_v5  ;;  %1052 = vmatpush.msra.mxu2 %v955_v7  ;;  %v1117_v5 = vld [vmem:[#allocation8 + $0x2d0] sm:$0xff] }
 0x178   : > { %1030 = vmatpush.msra.mxu1 %v990_v2  ;;  %1070 = vmatpush.msra.mxu3 %v991_v4  ;;  %v1122_v2 = vld [vmem:[#allocation8 + $0x2f8] sm:$0xff]  ;;  %v1120_v4 = vld [vmem:[#allocation8 + $0x2e8] sm:$0xff]  ;;  %v1153_v7 = vld [vmem:[#allocation8 + $0x3f0] sm:$0xff] }
 0x179   : > { %1013 = vmatpush.msra.mxu0 %v952_v9  ;;  %1053 = vmatpush.msra.mxu2 %v953_v11  ;;  %v1151_v9 = vld [vmem:[#allocation8 + $0x3e0] sm:$0xff]  ;;  %v1116_v11 = vld [vmem:[#allocation8 + $0x2c8] sm:$0xff] }
 0x17a   : > { %1031 = vmatpush.msra.mxu1 %v988_v6  ;;  %1071 = vmatpush.msra.mxu3 %v989_v8  ;;  %v1118_v6 = vld [vmem:[#allocation8 + $0x2d8] sm:$0xff] }
 0x17b   : > { %1014 = vmatpush.msra.mxu0 %v950_v13  ;;  %1054 = vmatpush.msra.mxu2 %v951_v15  ;;  %v1154_v8 = vld [vmem:[#allocation8 + $0x3f8] sm:$0xff]  ;;  %v1149_v13 = vld [vmem:[#allocation8 + $0x3d0] sm:$0xff] }
 0x17c   : > { %1032 = vmatpush.msra.mxu1 %v986_v10  ;;  %1072 = vmatpush.msra.mxu3 %v987_v12  ;;  %v1115_v10 = vld [vmem:[#allocation8 + $0x2c0] sm:$0xff]  ;;  %v1152_v12 = vld [vmem:[#allocation8 + $0x3e8] sm:$0xff]  ;;  %v1113_v15 = vld [vmem:[#allocation8 + $0x2b0] sm:$0xff] }
 0x17d   : > { %1015 = vmatpush.msra.mxu0 %v948_v17  ;;  %1055 = vmatpush.msra.mxu2 %v949_v19  ;;  %v1147_v17 = vld [vmem:[#allocation8 + $0x3c0] sm:$0xff] }
 0x17e   : > { %1033 = vmatpush.msra.mxu1 %v984_v14  ;;  %1073 = vmatpush.msra.mxu3 %v985_v16  ;;  %v1150_v14 = vld [vmem:[#allocation8 + $0x3d8] sm:$0xff]  ;;  %v1111_v19 = vld [vmem:[#allocation8 + $0x2a0] sm:$0xff] }
 0x17f   : > { %1016 = vmatpush.msra.mxu0 %v946_v21  ;;  %1056 = vmatpush.msra.mxu2 %v947_v23  ;;  %v1114_v16 = vld [vmem:[#allocation8 + $0x2b8] sm:$0xff]  ;;  %v1145_v21 = vld [vmem:[#allocation8 + $0x3b0] sm:$0xff] }
 0x180   : > { %1034 = vmatpush.msra.mxu1 %v982_v18  ;;  %1074 = vmatpush.msra.mxu3 %v983_v20  ;;  %v1148_v18 = vld [vmem:[#allocation8 + $0x3c8] sm:$0xff]  ;;  %v1109_v23 = vld [vmem:[#allocation8 + $0x290] sm:$0xff] }
 0x181   : > { %1017 = vmatpush.msra.mxu0 %v944_v25  ;;  %1057 = vmatpush.msra.mxu2 %v945_v27  ;;  %v1112_v20 = vld [vmem:[#allocation8 + $0x2a8] sm:$0xff]  ;;  %v1143_v25 = vld [vmem:[#allocation8 + $0x3a0] sm:$0xff] }
 0x182   : > { %1035 = vmatpush.msra.mxu1 %v980_v22  ;;  %1075 = vmatpush.msra.mxu3 %v981_v24  ;;  %v1146_v22 = vld [vmem:[#allocation8 + $0x3b8] sm:$0xff]  ;;  %v1107_v27 = vld [vmem:[#allocation8 + $0x280] sm:$0xff] }
 0x183   : > { %1018 = vmatpush.msra.mxu0 %v942_v29  ;;  %1058 = vmatpush.msra.mxu2 %v943_v31  ;;  %v1110_v24 = vld [vmem:[#allocation8 + $0x298] sm:$0xff]  ;;  %v1141_v29 = vld [vmem:[#allocation8 + $0x390] sm:$0xff] }
 0x184   : > { %1036 = vmatpush.msra.mxu1 %v978_v26  ;;  %1076 = vmatpush.msra.mxu3 %v979_v28  ;;  %v1144_v26 = vld [vmem:[#allocation8 + $0x3a8] sm:$0xff]  ;;  %v1105_v31 = vld [vmem:[#allocation8 + $0x270] sm:$0xff] }
 0x185   : > { %1019 = vmatpush.msra.mxu0 %v940_v33  ;;  %v1108_v28 = vld [vmem:[#allocation8 + $0x288] sm:$0xff]  ;;  %v1139_v33 = vld [vmem:[#allocation8 + $0x380] sm:$0xff] }
 0x186   : > { %1037 = vmatpush.msra.mxu1 %v976_v30  ;;  %1077 = vmatpush.msra.mxu3 %v977_v32  ;;  %v1142_v30 = vld [vmem:[#allocation8 + $0x398] sm:$0xff] }
 0x187   : > { %v1106_v32 = vld [vmem:[#allocation8 + $0x278] sm:$0xff] }
 0x188   : > { %1038 = vmatpush.msra.mxu1 %v974_v34  ;;  %v1140_v34 = vld [vmem:[#allocation8 + $0x388] sm:$0xff] }
 0x1e6   : > { %v710_v36 = vpop.f32.mrf.mxu0 }
 0x1e7   : > { %v711_v37 = vadd.f32 %v710_v36, %v689_v35  ;;  %v941_v35 = vld [vmem:[#allocation8 + $0x28] sm:$0xff]  ;;  %v975_v36 = vld [vmem:[#allocation8 + $0x138] sm:$0xff] }
 0x1e8   : > { %1059 = vmatpush.msra.mxu2 %v941_v35  ;;  %1078 = vmatpush.msra.mxu3 %v975_v36  ;;  %v1103_v35 = vld [vmem:[#allocation8 + $0x260] sm:$0xff]  ;;  %v1104_v36 = vld [vmem:[#allocation8 + $0x268] sm:$0xff] }
 0x1ec   : > { %v730_v38 = vpop.f32.mrf.mxu1  ;;  %v750_v41 = vpop.f32.mrf.mxu2 }
 0x1ed   : > { %v731_v39 = vadd.f32 %v730_v38, %v711_v37  ;;  %v751_v44 = vadd.f32 %v750_v41, %v690_v40  ;;  %v938_v37 = vld [vmem:[#allocation8 + $0x10] sm:$0xff]  ;;  %v972_v38 = vld [vmem:[#allocation8 + $0x120] sm:$0xff]  ;;  %v973_v40 = vld [vmem:[#allocation8 + $0x128] sm:$0xff] }
 0x1ee   : > { %1020 = vmatpush.msra.mxu0 %v938_v37  ;;  %1039 = vmatpush.msra.mxu1 %v972_v38  ;;  %v936_v41 = vld [vmem:[#allocation8] sm:$0xff]  ;;  %v1101_v37 = vld [vmem:[#allocation8 + $0x250] sm:$0xff]  ;;  %v1102_v38 = vld [vmem:[#allocation8 + $0x258] sm:$0xff] }
 0x1ef   : > { %v773_v42 = vmul.f32 0.01, %v731_v39  ;;  %1079 = vmatpush.msra.mxu3 %v973_v40  ;;  %v1137_v40 = vld [vmem:[#allocation8 + $0x370] sm:$0xff] }
 0x1f0   : > { %1021 = vmatpush.msra.mxu0 %v936_v41  ;;  %v1100_v41 = vld [vmem:[#allocation8 + $0x248] sm:$0xff] }
 0x1f1   : > { %v775_v43 = vmax.f32 %v731_v39, %v773_v42  ;;  %v939_v39 = vld [vmem:[#allocation8 + $0x18] sm:$0xff]  ;;  %v970_v42 = vld [vmem:[#allocation8 + $0x110] sm:$0xff] }
 0x1f2   : > { %v770_v45 = vpop.f32.mrf.mxu3  ;;  %1060 = vmatpush.msra.mxu2 %v939_v39  ;;  %1040 = vmatpush.msra.mxu1 %v970_v42  ;;  %v1099_v39 = vld [vmem:[#allocation8 + $0x240] sm:$0xff]  ;;  %v1138_v42 = vld [vmem:[#allocation8 + $0x378] sm:$0xff] }
 0x1f3   : > { %v771_v46 = vadd.f32 %v770_v45, %v751_v44  ;;  %865 = vmatmul.f32.vlgmr.msrb.gmra.mxu0 %v775_v43  ;;  %905 = vmatmul.f32.vlgmr.msrb.gmra.mxu2 %v775_v43  ;;  %v937_v43 = vld [vmem:[#allocation8 + $0x8] sm:$0xff]  ;;  %v971_v44 = vld [vmem:[#allocation8 + $0x118] sm:$0xff]  ;;  %v968_v45 = vld [vmem:[#allocation8 + $0x100] sm:$0xff] }
 0x1f4   : > { %1061 = vmatpush.msra.mxu2 %v937_v43  ;;  %1080 = vmatpush.msra.mxu3 %v971_v44  ;;  %v1097_v43 = vld [vmem:[#allocation8 + $0x230] sm:$0xff]  ;;  %v1135_v44 = vld [vmem:[#allocation8 + $0x360] sm:$0xff] }
 0x1f5   : > { %v774_v47 = vmul.f32 0.01, %v771_v46  ;;  %1041 = vmatpush.msra.mxu1 %v968_v45  ;;  %1162 = vmatpush.msrb.mxu0 %v1121_v1  ;;  %v1098_v45 = vld [vmem:[#allocation8 + $0x238] sm:$0xff]  ;;  %v1124_v1 = vld [vmem:[#allocation8 + $0x308] sm:$0xff] }
 0x1f6   : > { %1202 = vmatpush.msrb.mxu2 %v1122_v2  ;;  %v1277_v2 = vld [vmem:[#allocation8 + $0x4f0] sm:$0xff] }
 0x1f7   : > { %v776_v48 = vmax.f32 %v771_v46, %v774_v47  ;;  %v969_v46 = vld [vmem:[#allocation8 + $0x108] sm:$0xff]  ;;  %v843_v47 = vld [vmem:[#allocation7 + $0x6] sm:$0x3]  ;;  %1163 = vmatpush.msrb.mxu0 %v1119_v3 }
 0x1f8   : > { %1081 = vmatpush.msra.mxu3 %v969_v46  ;;  %v845_v49 = vperm.slane %v843_v47, 0  ;;  %v846_v56 = vperm.slane %v843_v47, 1  ;;  %1203 = vmatpush.msrb.mxu2 %v1120_v4  ;;  %v1136_v46 = vld [vmem:[#allocation8 + $0x368] sm:$0xff]  ;;  %v1095_v47 = vld [vmem:[#allocation8 + $0x220] sm:$0xff]  ;;  %v1278_v3 = vld [vmem:[#allocation8 + $0x4f8] sm:$0xff] }
 0x1f9   : > { %885 = vmatmul.f32.vlgmr.msrb.gmra.mxu1 %v776_v48  ;;  %925 = vmatmul.f32.vlgmr.msrb.gmra.mxu3 %v776_v48  ;;  %v2216_v48 = vld [vmem:[%s2199_s15] sm:$0xff]  ;;  %v1275_v4 = vld [vmem:[#allocation8 + $0x4e0] sm:$0xff] }
 0x1fa   : > { %1182 = vmatpush.msrb.mxu1 %v1153_v7  ;;  %1222 = vmatpush.msrb.mxu3 %v1154_v8  ;;  %v1274_v7 = vld [vmem:[#allocation8 + $0x4d8] sm:$0xff]  ;;  %v1309_v8 = vld [vmem:[#allocation8 + $0x5f0] sm:$0xff] }
 0x1fb   : > { %1164 = vmatpush.msrb.mxu0 %v1117_v5  ;;  %1204 = vmatpush.msrb.mxu2 %v1118_v6  ;;  %v1276_v5 = vld [vmem:[#allocation8 + $0x4e8] sm:$0xff]  ;;  %v1273_v6 = vld [vmem:[#allocation8 + $0x4d0] sm:$0xff] }
 0x1fc   : > { %1183 = vmatpush.msrb.mxu1 %v1151_v9  ;;  %1223 = vmatpush.msrb.mxu3 %v1152_v12  ;;  %v1310_v9 = vld [vmem:[#allocation8 + $0x5f8] sm:$0xff]  ;;  %v1272_v12 = vld [vmem:[#allocation8 + $0x4c8] sm:$0xff] }
 0x1fd   : > { %1165 = vmatpush.msrb.mxu0 %v1115_v10  ;;  %1205 = vmatpush.msrb.mxu2 %v1116_v11  ;;  %v1307_v10 = vld [vmem:[#allocation8 + $0x5e0] sm:$0xff] }
 0x1fe   : > { %1184 = vmatpush.msrb.mxu1 %v1149_v13  ;;  %1224 = vmatpush.msrb.mxu3 %v1150_v14  ;;  %v1271_v11 = vld [vmem:[#allocation8 + $0x4c0] sm:$0xff]  ;;  %v1308_v13 = vld [vmem:[#allocation8 + $0x5e8] sm:$0xff]  ;;  %v1305_v14 = vld [vmem:[#allocation8 + $0x5d0] sm:$0xff] }
 0x1ff   : > { %1166 = vmatpush.msrb.mxu0 %v1113_v15  ;;  %1206 = vmatpush.msrb.mxu2 %v1114_v16  ;;  %v1306_v15 = vld [vmem:[#allocation8 + $0x5d8] sm:$0xff]  ;;  %v1269_v16 = vld [vmem:[#allocation8 + $0x4b0] sm:$0xff] }
 0x200   : > { %1185 = vmatpush.msrb.mxu1 %v1147_v17  ;;  %1225 = vmatpush.msrb.mxu3 %v1148_v18  ;;  %v1270_v17 = vld [vmem:[#allocation8 + $0x4b8] sm:$0xff]  ;;  %v1303_v18 = vld [vmem:[#allocation8 + $0x5c0] sm:$0xff] }
 0x201   : > { %1042 = vmatmul.f32.vlgmr.msra.gmra.mxu1 %v2216_v48  ;;  %1082 = vmatmul.f32.vlgmr.msra.gmra.mxu3 %v2216_v48 }
 0x202   : > { %1167 = vmatpush.msrb.mxu0 %v1111_v19  ;;  %1207 = vmatpush.msrb.mxu2 %v1112_v20  ;;  %v1304_v19 = vld [vmem:[#allocation8 + $0x5c8] sm:$0xff]  ;;  %v1267_v20 = vld [vmem:[#allocation8 + $0x4a0] sm:$0xff] }
 0x203   : > { %1186 = vmatpush.msrb.mxu1 %v1145_v21  ;;  %1226 = vmatpush.msrb.mxu3 %v1146_v22  ;;  %v1268_v21 = vld [vmem:[#allocation8 + $0x4a8] sm:$0xff]  ;;  %v1301_v22 = vld [vmem:[#allocation8 + $0x5b0] sm:$0xff] }
 0x204   : > { %1168 = vmatpush.msrb.mxu0 %v1109_v23  ;;  %1208 = vmatpush.msrb.mxu2 %v1110_v24  ;;  %v1302_v23 = vld [vmem:[#allocation8 + $0x5b8] sm:$0xff]  ;;  %v1265_v24 = vld [vmem:[#allocation8 + $0x490] sm:$0xff] }
 0x205   : > { %1187 = vmatpush.msrb.mxu1 %v1143_v25  ;;  %1227 = vmatpush.msrb.mxu3 %v1144_v26  ;;  %v1266_v25 = vld [vmem:[#allocation8 + $0x498] sm:$0xff]  ;;  %v1000_v26 = vld [vmem:[#allocation10] sm:$0x3] }
 0x206   : > { %1169 = vmatpush.msrb.mxu0 %v1107_v27  ;;  %1209 = vmatpush.msrb.mxu2 %v1108_v28  ;;  %v1299_v27 = vld [vmem:[#allocation8 + $0x5a0] sm:$0xff]  ;;  %v1300_v28 = vld [vmem:[#allocation8 + $0x5a8] sm:$0xff] }
 0x207   : > { %1188 = vmatpush.msrb.mxu1 %v1141_v29  ;;  %1228 = vmatpush.msrb.mxu3 %v1142_v30  ;;  %v1263_v29 = vld [vmem:[#allocation8 + $0x480] sm:$0xff]  ;;  %v1264_v30 = vld [vmem:[#allocation8 + $0x488] sm:$0xff] }
 0x208   : > { %1170 = vmatpush.msrb.mxu0 %v1105_v31  ;;  %1210 = vmatpush.msrb.mxu2 %v1106_v32  ;;  %v1002_v31 = vperm.slane %v1000_v26, 0  ;;  %v1261_v32 = vld [vmem:[#allocation8 + $0x470] sm:$0xff] }
 0x209   : > { %1189 = vmatpush.msrb.mxu1 %v1139_v33  ;;  %1229 = vmatpush.msrb.mxu3 %v1140_v34  ;;  %v1262_v33 = vld [vmem:[#allocation8 + $0x478] sm:$0xff] }
 0x20a   : > { %1171 = vmatpush.msrb.mxu0 %v1103_v35  ;;  %1211 = vmatpush.msrb.mxu2 %v1104_v36 }
 0x20b   : > { %1190 = vmatpush.msrb.mxu1 %v1137_v40  ;;  %1230 = vmatpush.msrb.mxu3 %v1138_v42 }
 0x20c   : > { %1172 = vmatpush.msrb.mxu0 %v1101_v37  ;;  %1212 = vmatpush.msrb.mxu2 %v1102_v38  ;;  %v1003_v38 = vperm.slane %v1000_v26, 1  ;;  %v1463_v26 = vld [vmem:[#allocation8 + $0x7e0] sm:$0xff] }
 0x20d   : > { %1191 = vmatpush.msrb.mxu1 %v1135_v44  ;;  %1231 = vmatpush.msrb.mxu3 %v1136_v46 }
 0x20e   : > { %1173 = vmatpush.msrb.mxu0 %v1099_v39  ;;  %1213 = vmatpush.msrb.mxu2 %v1100_v41 }
 0x210   : > { %1174 = vmatpush.msrb.mxu0 %v1097_v43  ;;  %1214 = vmatpush.msrb.mxu2 %v1098_v45 }
 0x212   : > { %1175 = vmatpush.msrb.mxu0 %v1095_v47  ;;  %v1259_v47 = vld [vmem:[#allocation8 + $0x460] sm:$0xff] }
 0x270   : > { %v866_v50 = vpop.f32.mrf.mxu0 }
 0x271   : > { %v867_v51 = vadd.f32 %v866_v50, %v845_v49  ;;  %v1133_v49 = vld [vmem:[#allocation8 + $0x350] sm:$0xff]  ;;  %v1096_v50 = vld [vmem:[#allocation8 + $0x228] sm:$0xff] }
 0x272   : > { %1192 = vmatpush.msrb.mxu1 %v1133_v49  ;;  %1215 = vmatpush.msrb.mxu2 %v1096_v50  ;;  %v1297_v49 = vld [vmem:[#allocation8 + $0x590] sm:$0xff]  ;;  %v1260_v50 = vld [vmem:[#allocation8 + $0x468] sm:$0xff] }
 0x276   : > { %v886_v52 = vpop.f32.mrf.mxu1  ;;  %v906_v57 = vpop.f32.mrf.mxu2 }
 0x277   : > { %v887_v53 = vadd.f32 %v886_v52, %v867_v51  ;;  %v907_v59 = vadd.f32 %v906_v57, %v846_v56  ;;  %v1134_v51 = vld [vmem:[#allocation8 + $0x358] sm:$0xff]  ;;  %v1093_v52 = vld [vmem:[#allocation8 + $0x210] sm:$0xff]  ;;  %v1091_v56 = vld [vmem:[#allocation8 + $0x200] sm:$0xff] }
 0x278   : > { %1232 = vmatpush.msrb.mxu3 %v1134_v51  ;;  %1176 = vmatpush.msrb.mxu0 %v1093_v52  ;;  %v1129_v57 = vld [vmem:[#allocation8 + $0x330] sm:$0xff]  ;;  %v1298_v51 = vld [vmem:[#allocation8 + $0x598] sm:$0xff] }
 0x279   : > { %1803 = vtanh.f32 %v887_v53  ;;  %v1131_v53 = vld [vmem:[#allocation8 + $0x340] sm:$0xff]  ;;  %v1257_v52 = vld [vmem:[#allocation8 + $0x450] sm:$0xff] }
 0x27a   : > { %1193 = vmatpush.msrb.mxu1 %v1131_v53  ;;  %1177 = vmatpush.msrb.mxu0 %v1091_v56  ;;  %v1295_v53 = vld [vmem:[#allocation8 + $0x580] sm:$0xff] }
 0x27b   : > { %v1255_v56 = vld [vmem:[#allocation8 + $0x440] sm:$0xff] }
 0x27c   : > { %v926_v58 = vpop.f32.mrf.mxu3  ;;  %1194 = vmatpush.msrb.mxu1 %v1129_v57  ;;  %v1293_v57 = vld [vmem:[#allocation8 + $0x570] sm:$0xff] }
 0x27d   : > { %v927_v61 = vadd.f32 %v926_v58, %v907_v59  ;;  %v1092_v58 = vld [vmem:[#allocation8 + $0x208] sm:$0xff]  ;;  %v1130_v59 = vld [vmem:[#allocation8 + $0x338] sm:$0xff] }
 0x27e   : > { %v1043_v35 = vpop.f32.mrf.mxu1 }
 0x27f   : > { %v1804_v54 = vpop.eup %1803 }
 0x280   : > { %v930_v55 = vmul.f32 1.442695, %v1804_v54  ;;  %934 = vadd.xlane.f32.xlu0 %v1804_v54  ;;  %v1094_v54 = vld [vmem:[#allocation8 + $0x218] sm:$0xff] }
 0x281   : > { %1216 = vmatpush.msrb.mxu2 %v1094_v54  ;;  %v1258_v54 = vld [vmem:[#allocation8 + $0x458] sm:$0xff] }
 0x282   : > { %1805 = vpow2.f32 %v930_v55  ;;  %v1132_v55 = vld [vmem:[#allocation8 + $0x348] sm:$0xff] }
 0x283   : > { %1233 = vmatpush.msrb.mxu3 %v1132_v55  ;;  %1217 = vmatpush.msrb.mxu2 %v1092_v58  ;;  %v1296_v55 = vld [vmem:[#allocation8 + $0x588] sm:$0xff] }
 0x284   : > { %v1083_v41 = vpop.f32.mrf.mxu3  ;;  %v1256_v58 = vld [vmem:[#allocation8 + $0x448] sm:$0xff] }
 0x285   : > { %1234 = vmatpush.msrb.mxu3 %v1130_v59  ;;  %v1294_v59 = vld [vmem:[#allocation8 + $0x578] sm:$0xff] }
 0x288   : > { %v1806_v60 = vpop.eup %1805 }
 0x289   : > { %v932_v63 = vmul.f32 %v1812_v62, %v1806_v60  ;;  %v1127_v60 = vld [vmem:[#allocation8 + $0x320] sm:$0xff]  ;;  %v1125_v62 = vld [vmem:[#allocation8 + $0x310] sm:$0xff] }
 0x28a   : > { %1195 = vmatpush.msrb.mxu1 %v1127_v60  ;;  %v1253_v60 = vld [vmem:[#allocation8 + $0x430] sm:$0xff] }
 0x28b   : > { %v933_v0 = vadd.f32 %v932_v63, %v927_v61  ;;  %v1128_v61 = vld [vmem:[#allocation8 + $0x328] sm:$0xff]  ;;  %v1126_v63 = vld [vmem:[#allocation8 + $0x318] sm:$0xff] }
 0x28c   : > { %1235 = vmatpush.msrb.mxu3 %v1128_v61  ;;  %1196 = vmatpush.msrb.mxu1 %v1125_v62  ;;  %v1291_v61 = vld [vmem:[#allocation8 + $0x560] sm:$0xff]  ;;  %v1254_v62 = vld [vmem:[#allocation8 + $0x438] sm:$0xff] }
 0x28d   : > { %1562 = vst [vmem:[%s2222_s7] sm:$0xff] %v933_v0  ;;  %1022 = vmatmul.f32.vlgmr.msra.gmra.mxu0 %v933_v0  ;;  %1062 = vmatmul.f32.vlgmr.msra.gmra.mxu2 %v933_v0  ;;  %v1123_v0 = vld [vmem:[#allocation8 + $0x300] sm:$0xff] }
 0x28e   : > { %1236 = vmatpush.msrb.mxu3 %v1126_v63  ;;  %1197 = vmatpush.msrb.mxu1 %v1123_v0  ;;  %v1292_v63 = vld [vmem:[#allocation8 + $0x568] sm:$0xff]  ;;  %v1251_v0 = vld [vmem:[#allocation8 + $0x420] sm:$0xff] }
 0x28f   : > { %1318 = vmatpush.msra.mxu0 %v1277_v2  ;;  %1358 = vmatpush.msra.mxu2 %v1278_v3  ;;  %v1252_v2 = vld [vmem:[#allocation8 + $0x428] sm:$0xff]  ;;  %v1290_v3 = vld [vmem:[#allocation8 + $0x558] sm:$0xff] }
 0x290   : > { %1237 = vmatpush.msrb.mxu3 %v1124_v1  ;;  %1338 = vmatpush.msra.mxu1 %v1309_v8  ;;  %v1289_v1 = vld [vmem:[#allocation8 + $0x550] sm:$0xff]  ;;  %v1247_v8 = vld [vmem:[#allocation8 + $0x400] sm:$0xff] }
 0x291   : > { %1319 = vmatpush.msra.mxu0 %v1275_v4  ;;  %1359 = vmatpush.msra.mxu2 %v1276_v5  ;;  %v1249_v4 = vld [vmem:[#allocation8 + $0x410] sm:$0xff]  ;;  %v1287_v5 = vld [vmem:[#allocation8 + $0x540] sm:$0xff] }
 0x292   : > { %1378 = vmatpush.msra.mxu3 %v1310_v9  ;;  %1339 = vmatpush.msra.mxu1 %v1307_v10  ;;  %v1285_v9 = vld [vmem:[#allocation8 + $0x530] sm:$0xff]  ;;  %v1248_v10 = vld [vmem:[#allocation8 + $0x408] sm:$0xff] }
 0x293   : > { %1320 = vmatpush.msra.mxu0 %v1273_v6  ;;  %1360 = vmatpush.msra.mxu2 %v1274_v7  ;;  %v1250_v6 = vld [vmem:[#allocation8 + $0x418] sm:$0xff]  ;;  %v1288_v7 = vld [vmem:[#allocation8 + $0x548] sm:$0xff] }
 0x294   : > { %1379 = vmatpush.msra.mxu3 %v1308_v13  ;;  %1340 = vmatpush.msra.mxu1 %v1305_v14  ;;  %v1284_v13 = vld [vmem:[#allocation8 + $0x528] sm:$0xff]  ;;  %v1281_v14 = vld [vmem:[#allocation8 + $0x510] sm:$0xff] }
 0x295   : > { %1321 = vmatpush.msra.mxu0 %v1271_v11  ;;  %1361 = vmatpush.msra.mxu2 %v1272_v12  ;;  %v1286_v11 = vld [vmem:[#allocation8 + $0x538] sm:$0xff]  ;;  %v1283_v12 = vld [vmem:[#allocation8 + $0x520] sm:$0xff] }
 0x296   : > { %1380 = vmatpush.msra.mxu3 %v1306_v15  ;;  %1341 = vmatpush.msra.mxu1 %v1303_v18  ;;  %v1282_v15 = vld [vmem:[#allocation8 + $0x518] sm:$0xff]  ;;  %v1433_v18 = vld [vmem:[#allocation8 + $0x6f0] sm:$0xff] }
 0x297   : > { %1322 = vmatpush.msra.mxu0 %v1269_v16  ;;  %1362 = vmatpush.msra.mxu2 %v1270_v17  ;;  %v1279_v16 = vld [vmem:[#allocation8 + $0x500] sm:$0xff]  ;;  %v1280_v17 = vld [vmem:[#allocation8 + $0x508] sm:$0xff] }
 0x298   : > { %1381 = vmatpush.msra.mxu3 %v1304_v19  ;;  %1342 = vmatpush.msra.mxu1 %v1301_v22  ;;  %v1434_v19 = vld [vmem:[#allocation8 + $0x6f8] sm:$0xff]  ;;  %v1429_v22 = vld [vmem:[#allocation8 + $0x6d0] sm:$0xff] }
 0x299   : > { %1323 = vmatpush.msra.mxu0 %v1267_v20  ;;  %1363 = vmatpush.msra.mxu2 %v1268_v21  ;;  %v1431_v20 = vld [vmem:[#allocation8 + $0x6e0] sm:$0xff]  ;;  %v1432_v21 = vld [vmem:[#allocation8 + $0x6e8] sm:$0xff] }
 0x29a   : > { %1382 = vmatpush.msra.mxu3 %v1302_v23  ;;  %1343 = vmatpush.msra.mxu1 %v1299_v27  ;;  %v1430_v23 = vld [vmem:[#allocation8 + $0x6d8] sm:$0xff]  ;;  %v1427_v27 = vld [vmem:[#allocation8 + $0x6c0] sm:$0xff] }
 0x29b   : > { %1324 = vmatpush.msra.mxu0 %v1265_v24  ;;  %1364 = vmatpush.msra.mxu2 %v1266_v25  ;;  %v1465_v24 = vld [vmem:[#allocation8 + $0x7f0] sm:$0xff]  ;;  %v1466_v25 = vld [vmem:[#allocation8 + $0x7f8] sm:$0xff] }
 0x29c   : > { %1383 = vmatpush.msra.mxu3 %v1300_v28  ;;  %1344 = vmatpush.msra.mxu1 %v1297_v49  ;;  %v1428_v28 = vld [vmem:[#allocation8 + $0x6c8] sm:$0xff]  ;;  %v1417_v49 = vld [vmem:[#allocation8 + $0x670] sm:$0xff] }
 0x29d   : > { %1325 = vmatpush.msra.mxu0 %v1263_v29  ;;  %1365 = vmatpush.msra.mxu2 %v1264_v30  ;;  %v1464_v29 = vld [vmem:[#allocation8 + $0x7e8] sm:$0xff]  ;;  %v1461_v30 = vld [vmem:[#allocation8 + $0x7d0] sm:$0xff] }
 0x29e   : > { %1384 = vmatpush.msra.mxu3 %v1298_v51  ;;  %1345 = vmatpush.msra.mxu1 %v1295_v53 }
 0x29f   : > { %1326 = vmatpush.msra.mxu0 %v1261_v32  ;;  %1366 = vmatpush.msra.mxu2 %v1262_v33  ;;  %v1425_v32 = vld [vmem:[#allocation8 + $0x6b0] sm:$0xff]  ;;  %v1426_v33 = vld [vmem:[#allocation8 + $0x6b8] sm:$0xff] }
 0x2a0   : > { %1385 = vmatpush.msra.mxu3 %v1296_v55  ;;  %1346 = vmatpush.msra.mxu1 %v1293_v57 }
 0x2a1   : > { %1327 = vmatpush.msra.mxu0 %v1259_v47  ;;  %1367 = vmatpush.msra.mxu2 %v1260_v50  ;;  %v1418_v50 = vld [vmem:[#allocation8 + $0x678] sm:$0xff] }
 0x2a2   : > { %1386 = vmatpush.msra.mxu3 %v1294_v59  ;;  %1347 = vmatpush.msra.mxu1 %v1291_v61 }
 0x2a3   : > { %1328 = vmatpush.msra.mxu0 %v1257_v52  ;;  %1368 = vmatpush.msra.mxu2 %v1258_v54 }
 0x2a4   : > { %1387 = vmatpush.msra.mxu3 %v1292_v63  ;;  %1348 = vmatpush.msra.mxu1 %v1289_v1  ;;  %v1453_v1 = vld [vmem:[#allocation8 + $0x790] sm:$0xff] }
 0x2a5   : > { %1329 = vmatpush.msra.mxu0 %v1255_v56  ;;  %1369 = vmatpush.msra.mxu2 %v1256_v58 }
 0x2a6   : > { %1388 = vmatpush.msra.mxu3 %v1290_v3  ;;  %1349 = vmatpush.msra.mxu1 %v1287_v5  ;;  %v1454_v3 = vld [vmem:[#allocation8 + $0x798] sm:$0xff]  ;;  %v1451_v5 = vld [vmem:[#allocation8 + $0x780] sm:$0xff] }
 0x2a7   : > { %1330 = vmatpush.msra.mxu0 %v1253_v60  ;;  %1370 = vmatpush.msra.mxu2 %v1254_v62 }
 0x2a8   : > { %1389 = vmatpush.msra.mxu3 %v1288_v7  ;;  %1350 = vmatpush.msra.mxu1 %v1285_v9  ;;  %v1452_v7 = vld [vmem:[#allocation8 + $0x788] sm:$0xff]  ;;  %v1449_v9 = vld [vmem:[#allocation8 + $0x770] sm:$0xff] }
 0x2a9   : > { %1331 = vmatpush.msra.mxu0 %v1251_v0  ;;  %1371 = vmatpush.msra.mxu2 %v1252_v2  ;;  %v1415_v0 = vld [vmem:[#allocation8 + $0x660] sm:$0xff]  ;;  %v1416_v2 = vld [vmem:[#allocation8 + $0x668] sm:$0xff] }
 0x2aa   : > { %1390 = vmatpush.msra.mxu3 %v1286_v11  ;;  %1351 = vmatpush.msra.mxu1 %v1283_v12  ;;  %v1450_v11 = vld [vmem:[#allocation8 + $0x778] sm:$0xff]  ;;  %v1409_v12 = vld [vmem:[#allocation8 + $0x630] sm:$0xff] }
 0x2ab   : > { %1332 = vmatpush.msra.mxu0 %v1249_v4  ;;  %1372 = vmatpush.msra.mxu2 %v1250_v6  ;;  %v1413_v4 = vld [vmem:[#allocation8 + $0x650] sm:$0xff]  ;;  %v1414_v6 = vld [vmem:[#allocation8 + $0x658] sm:$0xff] }
 0x2ac   : > { %1391 = vmatpush.msra.mxu3 %v1284_v13  ;;  %1352 = vmatpush.msra.mxu1 %v1281_v14  ;;  %v1447_v13 = vld [vmem:[#allocation8 + $0x760] sm:$0xff]  ;;  %v1410_v14 = vld [vmem:[#allocation8 + $0x638] sm:$0xff] }
 0x2ad   : > { %1333 = vmatpush.msra.mxu0 %v1247_v8  ;;  %1373 = vmatpush.msra.mxu2 %v1248_v10  ;;  %v1411_v8 = vld [vmem:[#allocation8 + $0x640] sm:$0xff]  ;;  %v1412_v10 = vld [vmem:[#allocation8 + $0x648] sm:$0xff] }
 0x2ae   : > { %1392 = vmatpush.msra.mxu3 %v1282_v15  ;;  %1353 = vmatpush.msra.mxu1 %v1279_v16  ;;  %v1448_v15 = vld [vmem:[#allocation8 + $0x768] sm:$0xff]  ;;  %v1407_v16 = vld [vmem:[#allocation8 + $0x620] sm:$0xff] }
 0x2b0   : > { %1393 = vmatpush.msra.mxu3 %v1280_v17  ;;  %v1445_v17 = vld [vmem:[#allocation8 + $0x750] sm:$0xff] }
 0x30a   : > { %v1023_v34 = vpop.f32.mrf.mxu0 }
 0x30b   : > { %v1024_v36 = vadd.f32 %v1023_v34, %v1002_v31  ;;  %v1462_v31 = vld [vmem:[#allocation8 + $0x7d8] sm:$0xff]  ;;  %v1459_v34 = vld [vmem:[#allocation8 + $0x7c0] sm:$0xff] }
 0x30d   : > { %v1044_v37 = vadd.f32 %v1043_v35, %v1024_v36  ;;  %v1460_v35 = vld [vmem:[#allocation8 + $0x7c8] sm:$0xff]  ;;  %v1423_v36 = vld [vmem:[#allocation8 + $0x6a0] sm:$0xff] }
 0x30f   : > { %v1086_v39 = vmul.f32 0.01, %v1044_v37 }
 0x310   : > { %v1063_v40 = vpop.f32.mrf.mxu2 }
 0x311   : > { %v1088_v42 = vmax.f32 %v1044_v37, %v1086_v39  ;;  %v1064_v43 = vadd.f32 %v1063_v40, %v1003_v38  ;;  %v1424_v37 = vld [vmem:[#allocation8 + $0x6a8] sm:$0xff]  ;;  %v1457_v38 = vld [vmem:[#allocation8 + $0x7b0] sm:$0xff]  ;;  %v1458_v39 = vld [vmem:[#allocation8 + $0x7b8] sm:$0xff] }
 0x312   : > { %v1421_v40 = vld [vmem:[#allocation8 + $0x690] sm:$0xff] }
 0x313   : > { %v1084_v44 = vadd.f32 %v1083_v41, %v1064_v43  ;;  %1178 = vmatmul.f32.vlgmr.msrb.gmra.mxu0 %v1088_v42  ;;  %1218 = vmatmul.f32.vlgmr.msrb.gmra.mxu2 %v1088_v42  ;;  %v1422_v41 = vld [vmem:[#allocation8 + $0x698] sm:$0xff]  ;;  %v1156_v42 = vld [vmem:[#allocation10 + $0x2] sm:$0x3] }
 0x314   : > { %1474 = vmatpush.msrb.mxu0 %v1433_v18  ;;  %1514 = vmatpush.msrb.mxu2 %v1434_v19  ;;  %v1455_v43 = vld [vmem:[#allocation8 + $0x7a0] sm:$0xff]  ;;  %v1158_v47 = vperm.slane %v1156_v42, 0  ;;  %v1159_v55 = vperm.slane %v1156_v42, 1  ;;  %v1408_v18 = vld [vmem:[#allocation8 + $0x628] sm:$0xff]  ;;  %v1446_v19 = vld [vmem:[#allocation8 + $0x758] sm:$0xff] }
 0x315   : > { %v1087_v45 = vmul.f32 0.01, %v1084_v44 }
 0x316   : > { %1475 = vmatpush.msrb.mxu0 %v1431_v20  ;;  %1515 = vmatpush.msrb.mxu2 %v1432_v21  ;;  %v1405_v20 = vld [vmem:[#allocation8 + $0x610] sm:$0xff]  ;;  %v1443_v21 = vld [vmem:[#allocation8 + $0x740] sm:$0xff] }
 0x317   : > { %v1089_v46 = vmax.f32 %v1084_v44, %v1087_v45  ;;  %v1456_v44 = vld [vmem:[#allocation8 + $0x7a8] sm:$0xff]  ;;  %v1419_v45 = vld [vmem:[#allocation8 + $0x680] sm:$0xff] }
 0x318   : > { %1476 = vmatpush.msrb.mxu0 %v1429_v22  ;;  %1516 = vmatpush.msrb.mxu2 %v1430_v23  ;;  %v1406_v22 = vld [vmem:[#allocation8 + $0x618] sm:$0xff]  ;;  %v1444_v23 = vld [vmem:[#allocation8 + $0x748] sm:$0xff] }
 0x319   : > { %1198 = vmatmul.f32.vlgmr.msrb.gmra.mxu1 %v1089_v46  ;;  %1238 = vmatmul.f32.vlgmr.msrb.gmra.mxu3 %v1089_v46  ;;  %v1420_v46 = vld [vmem:[#allocation8 + $0x688] sm:$0xff] }
 0x31a   : > { %1494 = vmatpush.msrb.mxu1 %v1465_v24  ;;  %1534 = vmatpush.msrb.mxu3 %v1466_v25  ;;  %v1403_v24 = vld [vmem:[#allocation8 + $0x600] sm:$0xff]  ;;  %v1441_v25 = vld [vmem:[#allocation8 + $0x730] sm:$0xff] }
 0x31b   : > { %1477 = vmatpush.msrb.mxu0 %v1427_v27  ;;  %1517 = vmatpush.msrb.mxu2 %v1428_v28  ;;  %v1442_v27 = vld [vmem:[#allocation8 + $0x738] sm:$0xff]  ;;  %v1439_v28 = vld [vmem:[#allocation8 + $0x720] sm:$0xff] }
 0x31c   : > { %1495 = vmatpush.msrb.mxu1 %v1463_v26  ;;  %1535 = vmatpush.msrb.mxu3 %v1464_v29  ;;  %v1404_v26 = vld [vmem:[#allocation8 + $0x608] sm:$0xff] }
 0x31d   : > { %1478 = vmatpush.msrb.mxu0 %v1425_v32  ;;  %1518 = vmatpush.msrb.mxu2 %v1426_v33  ;;  %v1440_v29 = vld [vmem:[#allocation8 + $0x728] sm:$0xff]  ;;  %v1435_v32 = vld [vmem:[#allocation8 + $0x700] sm:$0xff] }
 0x31e   : > { %1496 = vmatpush.msrb.mxu1 %v1461_v30  ;;  %1536 = vmatpush.msrb.mxu3 %v1462_v31  ;;  %v1437_v30 = vld [vmem:[#allocation8 + $0x710] sm:$0xff]  ;;  %v1438_v31 = vld [vmem:[#allocation8 + $0x718] sm:$0xff]  ;;  %v1436_v33 = vld [vmem:[#allocation8 + $0x708] sm:$0xff] }
 0x31f   : > { %1479 = vmatpush.msrb.mxu0 %v1423_v36  ;;  %1519 = vmatpush.msrb.mxu2 %v1424_v37 }
 0x320   : > { %1497 = vmatpush.msrb.mxu1 %v1459_v34  ;;  %1537 = vmatpush.msrb.mxu3 %v1460_v35  ;;  %v1312_v34 = vld [vmem:[#allocation10 + $0x4] sm:$0x3] }
 0x321   : > { %1480 = vmatpush.msrb.mxu0 %v1421_v40  ;;  %1520 = vmatpush.msrb.mxu2 %v1422_v41  ;;  %v1314_v35 = vperm.slane %v1312_v34, 0  ;;  %v1315_v40 = vperm.slane %v1312_v34, 1 }
 0x322   : > { %1498 = vmatpush.msrb.mxu1 %v1457_v38  ;;  %1538 = vmatpush.msrb.mxu3 %v1458_v39 }
 0x323   : > { %1481 = vmatpush.msrb.mxu0 %v1419_v45  ;;  %1521 = vmatpush.msrb.mxu2 %v1420_v46 }
 0x324   : > { %1499 = vmatpush.msrb.mxu1 %v1455_v43  ;;  %1539 = vmatpush.msrb.mxu3 %v1456_v44 }
 0x325   : > { %1482 = vmatpush.msrb.mxu0 %v1417_v49  ;;  %1522 = vmatpush.msrb.mxu2 %v1418_v50  ;;  %v1468_v50 = vld [vmem:[#allocation10 + $0x6] sm:$0x3] }
 0x326   : > { %1500 = vmatpush.msrb.mxu1 %v1453_v1  ;;  %1540 = vmatpush.msrb.mxu3 %v1454_v3 }
 0x327   : > { %1483 = vmatpush.msrb.mxu0 %v1415_v0  ;;  %1523 = vmatpush.msrb.mxu2 %v1416_v2  ;;  %v935_v2 = vpop.xlane.xlu0 %934 }
 0x328   : > { %1501 = vmatpush.msrb.mxu1 %v1451_v5  ;;  %1541 = vmatpush.msrb.mxu3 %v1452_v7 }
 0x329   : > { %1484 = vmatpush.msrb.mxu0 %v1413_v4  ;;  %1524 = vmatpush.msrb.mxu2 %v1414_v6 }
 0x32a   : > { %1502 = vmatpush.msrb.mxu1 %v1449_v9  ;;  %1542 = vmatpush.msrb.mxu3 %v1450_v11 }
 0x32b   : > { %1485 = vmatpush.msrb.mxu0 %v1411_v8  ;;  %1525 = vmatpush.msrb.mxu2 %v1412_v10 }
 0x32c   : > { %1503 = vmatpush.msrb.mxu1 %v1447_v13  ;;  %1543 = vmatpush.msrb.mxu3 %v1448_v15 }
 0x32d   : > { %1486 = vmatpush.msrb.mxu0 %v1409_v12  ;;  %1526 = vmatpush.msrb.mxu2 %v1410_v14 }
 0x32e   : > { %1504 = vmatpush.msrb.mxu1 %v1445_v17  ;;  %1544 = vmatpush.msrb.mxu3 %v1446_v19 }
 0x32f   : > { %1487 = vmatpush.msrb.mxu0 %v1407_v16  ;;  %1527 = vmatpush.msrb.mxu2 %v1408_v18 }
 0x330   : > { %1505 = vmatpush.msrb.mxu1 %v1443_v21  ;;  %1545 = vmatpush.msrb.mxu3 %v1444_v23 }
 0x331   : > { %1488 = vmatpush.msrb.mxu0 %v1405_v20  ;;  %1528 = vmatpush.msrb.mxu2 %v1406_v22 }
 0x332   : > { %1506 = vmatpush.msrb.mxu1 %v1441_v25  ;;  %1546 = vmatpush.msrb.mxu3 %v1442_v27 }
 0x333   : > { %1489 = vmatpush.msrb.mxu0 %v1403_v24  ;;  %1529 = vmatpush.msrb.mxu2 %v1404_v26 }
 0x334   : > { %1507 = vmatpush.msrb.mxu1 %v1439_v28  ;;  %1547 = vmatpush.msrb.mxu3 %v1440_v29 }
 0x336   : > { %1508 = vmatpush.msrb.mxu1 %v1437_v30  ;;  %1548 = vmatpush.msrb.mxu3 %v1438_v31 }
 0x338   : > { %1509 = vmatpush.msrb.mxu1 %v1435_v32  ;;  %1549 = vmatpush.msrb.mxu3 %v1436_v33 }
 0x390   : > { %v1179_v51 = vpop.f32.mrf.mxu0 }
 0x391   : > { %v1180_v52 = vadd.f32 %v1179_v51, %v1158_v47  ;;  %v1470_v51 = vperm.slane %v1468_v50, 0 }
 0x396   : > { %v1199_v53 = vpop.f32.mrf.mxu1  ;;  %v1219_v56 = vpop.f32.mrf.mxu2 }
 0x397   : > { %v1200_v54 = vadd.f32 %v1199_v53, %v1180_v52  ;;  %v1220_v59 = vadd.f32 %v1219_v56, %v1159_v55 }
 0x399   : > { %v1242_v57 = vmul.f32 0.01, %v1200_v54 }
 0x39b   : > { %v1244_v58 = vmax.f32 %v1200_v54, %v1242_v57 }
 0x39c   : > { %v1239_v60 = vpop.f32.mrf.mxu3 }
 0x39d   : > { %v1240_v61 = vadd.f32 %v1239_v60, %v1220_v59  ;;  %1334 = vmatmul.f32.vlgmr.msra.gmra.mxu0 %v1244_v58  ;;  %1374 = vmatmul.f32.vlgmr.msra.gmra.mxu2 %v1244_v58  ;;  %v1471_v58 = vperm.slane %v1468_v50, 1 }
 0x39f   : > { %v1243_v62 = vmul.f32 0.01, %v1240_v61 }
 0x3a1   : > { %v1245_v63 = vmax.f32 %v1240_v61, %v1243_v62 }
 0x3a3   : > { %1354 = vmatmul.f32.vlgmr.msra.gmra.mxu1 %v1245_v63  ;;  %1394 = vmatmul.f32.vlgmr.msra.gmra.mxu3 %v1245_v63 }
 0x41a   : > { %v1335_v36 = vpop.f32.mrf.mxu0 }
 0x41b   : > { %v1336_v37 = vadd.f32 %v1335_v36, %v1314_v35 }
 0x420   : > { %v1355_v38 = vpop.f32.mrf.mxu1  ;;  %v1375_v41 = vpop.f32.mrf.mxu2 }
 0x421   : > { %v1356_v39 = vadd.f32 %v1355_v38, %v1336_v37  ;;  %v1376_v44 = vadd.f32 %v1375_v41, %v1315_v40 }
 0x423   : > { %v1398_v42 = vmul.f32 0.01, %v1356_v39 }
 0x425   : > { %v1400_v43 = vmax.f32 %v1356_v39, %v1398_v42 }
 0x426   : > { %v1395_v45 = vpop.f32.mrf.mxu3 }
 0x427   : > { %v1396_v46 = vadd.f32 %v1395_v45, %v1376_v44  ;;  %1490 = vmatmul.f32.vlgmr.msrb.gmra.mxu0 %v1400_v43  ;;  %1530 = vmatmul.f32.vlgmr.msrb.gmra.mxu2 %v1400_v43 }
 0x429   : > { %v1399_v47 = vmul.f32 0.01, %v1396_v46 }
 0x42b   : > { %v1401_v49 = vmax.f32 %v1396_v46, %v1399_v47 }
 0x42d   : > { %1510 = vmatmul.f32.vlgmr.msrb.gmra.mxu1 %v1401_v49  ;;  %1550 = vmatmul.f32.vlgmr.msrb.gmra.mxu3 %v1401_v49 }
 0x4a4   : > { %v1491_v52 = vpop.f32.mrf.mxu0 }
 0x4a5   : > { %v1492_v53 = vadd.f32 %v1491_v52, %v1470_v51 }
 0x4aa   : > { %v1511_v54 = vpop.f32.mrf.mxu1  ;;  %v1531_v59 = vpop.f32.mrf.mxu2 }
 0x4ab   : > { %v1512_v55 = vadd.f32 %v1511_v54, %v1492_v53  ;;  %v1532_v61 = vadd.f32 %v1531_v59, %v1471_v58 }
 0x4ad   : > { %1807 = vtanh.f32 %v1512_v55 }
 0x4b0   : > { %v1551_v60 = vpop.f32.mrf.mxu3 }
 0x4b1   : > { %v1552_v63 = vadd.f32 %v1551_v60, %v1532_v61 }
 0x4b3   : > { %v1808_v56 = vpop.eup %1807 }
 0x4b4   : > { %v1555_v57 = vmul.f32 1.442695, %v1808_v56  ;;  %1559 = vadd.xlane.f32.xlu0 %v1808_v56 }
 0x4b6   : > { %1809 = vpow2.f32 %v1555_v57 }
 0x4bc   : > { %v1810_v62 = vpop.eup %1809 }
 0x4bd   : > { %v1557_v0 = vmul.f32 %v2216_v48, %v1810_v62 }
 0x4bf   : > { %v1558_v1 = vadd.f32 %v1557_v0, %v1552_v63 }
 0x4c1   : > { %1563 = vst [vmem:[%s2222_s7 + $0x8] sm:$0xff] %v1558_v1 }
 0x527   : > { %v1560_v3 = vpop.xlane.xlu0 %1559 }
 0x528   : > { %v1561_v4 = vadd.f32 %v1560_v3, %v935_v2 }
 0x52a   : > { %1564 = vst [vmem:[%s2222_s7 + $0x10] sm:$0xff] %v1561_v4 }
 0x52b   : > { %1990 = shalt.err (!%p1987_p9)
}
 0x52c   : > { %1730 = dma.vmem_to_hbm [thread:$0]  (%p2164_p4), %s1580_s8, 384, %s1582_s9, %s1566_s16  }
 0x52d PF: > { %s1593_s12 = sand.u32 1, %s2025_s18   ;;  %p2275_p10 = scmp.ge.s32.totalorder %s2037_s21, 2 }
 0x52e   : > { %s1594_s26 = scalar_lea.sflag [#allocation4], %s1593_s12 }
 0x52f   : > { %p1750_p13 = pnand %p2275_p10, %p2168_p6 }
 0x531   : > { %p1751_p11 = pneg %p1750_p13 }
 0x533   : > { %2020 = dma.done.wait (%p1751_p11), %s1594_s26, 384  }
 0x534   : > { %2022 = vsyncadd (%p1751_p11), %s1594_s26, 4294966912  ;;  %p20_p0 = scmp.ge.s32.totalorder %s2138_s6, 4   ;;  %s2276_s18 = smov %s2029_s19 }
 0x535   : > { %s2277_s19 = smov %s2033_s20  ;;  %s2278_s20 = smov %s2149_s10 }
 0x536   : > { %s2279_s21 = smov %s2138_s6  ;;  %22 = sbr.rel (!%p20_p0) target bundleno = 7 (0x7), region = 113 }
 0x53b   :  { %1600 = vsyncpa [#allocation3], 1 }
 0x53c   :  { %1602 = vsyncpa [#allocation3 + $0x1], 1 }
 0x53d   :  { %1603 = vsyncpa [#allocation6], 1 }
 0x53e   :  { %1604 = vsyncpa [#allocation9], 1 }
 0x53f   :  { %1605 = vsyncpa [#allocation4], 1 }
 0x540   :  { %1607 = vsyncpa [#allocation4 + $0x1], 1 }

</bundles_post_ra>
